<compile_context>
chip_gen: v7x
topology: tpu7x:2x2x1
jax: 0.10.0
libtpu: 0.0.40
codegen_flags: <defaults>
</compile_context>

<pallas_src>
import math
import jax
import jax.numpy as jnp
from jax.experimental import pallas as pl
from jax.experimental.pallas import tpu as pltpu

# ----- small synthetic config (cfg) -----
N = 2                 # batch
MAX_V_LEN = 8         # cfg.max_v_len
MAX_T_LEN = 8         # cfg.max_t_len
L = MAX_V_LEN + MAX_T_LEN
D = 32                # cfg.hidden_size
H = 4                 # cfg.num_attention_heads
DH = D // H
INTER = 64            # cfg.intermediate_size
EPS = 1e-12           # cfg.layer_norm_eps
NL = N * L            # batch folded into the sublane axis

# ----- packed weight-slab layout (rows, 128) -----
SLAB_COLS = 128
ROW_WQKV = 0                      # rows [0, D)        cols [0, 3D)   Wqkv
ROW_WO   = ROW_WQKV + D           # rows [32, 64)      cols [0, D)    wo
ROW_W1   = ROW_WO + D             # rows [64, 96)      cols [0, INTER) w1
ROW_W2   = ROW_W1 + D             # rows [96, 160)     cols [0, D)    w2
ROW_BQKV = ROW_W2 + INTER         # row 160            cols [0, 3D)   bqkv
ROW_B1   = ROW_BQKV + 1           # row 161            cols [0, INTER) b1
ROW_VEC  = ROW_B1 + 1             # row 162            [gamma|beta|bo|b2]
SLAB_ROWS = ((ROW_VEC + 1 + 7) // 8) * 8   # pad rows to a multiple of 8 -> 168

assert 3 * D <= SLAB_COLS and INTER <= SLAB_COLS and 4 * D <= SLAB_COLS


def _layer_norm(x, gamma, beta):
    mu = jnp.mean(x, axis=-1, keepdims=True)
    var = jnp.mean(jnp.square(x - mu), axis=-1, keepdims=True)
    return (x - mu) * jax.lax.rsqrt(var + EPS) * gamma + beta


def _bf16(x):
    # MXU-operand cast only; accumulation and all elementwise math stay f32.
    return x.astype(jnp.bfloat16)


def encoder_layer_kernel(x_ref, mask_ref, w_ref, rands_ref, out_ref):
    x = x_ref[...]                                        # (NL, D) f32, batch in sublanes
    pad = mask_ref[...]                                   # (N, L)  pad mask (1 = keep)

    # ---- static slab views (zero-cost slices of the single weight DMA) ----
    wqkv = w_ref[ROW_WQKV:ROW_WQKV + D, 0:3 * D]          # (D, 3D)
    wo   = w_ref[ROW_WO:ROW_WO + D, 0:D]                  # (D, D)
    w1   = w_ref[ROW_W1:ROW_W1 + D, 0:INTER]              # (D, INTER)
    w2   = w_ref[ROW_W2:ROW_W2 + INTER, 0:D]              # (INTER, D)
    bqkv = w_ref[ROW_BQKV:ROW_BQKV + 1, 0:3 * D]          # (1, 3D)
    b1   = w_ref[ROW_B1:ROW_B1 + 1, 0:INTER]              # (1, INTER)
    gamma = w_ref[ROW_VEC:ROW_VEC + 1, 0 * D:1 * D]       # (1, D)
    beta  = w_ref[ROW_VEC:ROW_VEC + 1, 1 * D:2 * D]       # (1, D)
    bo    = w_ref[ROW_VEC:ROW_VEC + 1, 2 * D:3 * D]       # (1, D)
    b2    = w_ref[ROW_VEC:ROW_VEC + 1, 3 * D:4 * D]       # (1, D)

    # ---- fused QKV projection: ONE 2-D MXU matmul (NL, D) @ (D, 3D) ----
    qkv = jnp.dot(_bf16(x), _bf16(wqkv),
                  preferred_element_type=jnp.float32) + bqkv        # (NL, 3D) f32
    q_all = qkv[:, 0 * D:1 * D]                                      # (NL, D) head-major lanes
    k_all = qkv[:, 1 * D:2 * D]
    v_all = qkv[:, 2 * D:3 * D]

    # ---- shifted pad mask, built once in-kernel (no H broadcast, no HBM) ----
    rl = jax.lax.broadcasted_iota(jnp.int32, (L, L), 0)
    cl = jax.lax.broadcasted_iota(jnp.int32, (L, L), 1)
    vid_col = cl < MAX_V_LEN
    causal_txt = (rl >= MAX_V_LEN) & (cl >= MAX_V_LEN) & (cl <= rl)
    struct = jnp.where(vid_col | causal_txt, 1.0, 0.0)               # (L, L)
    m = struct[None, :, :] * pad[:, None, :]                         # (N, L, L)
    neg = (1.0 - m) * (-10000.0)                                     # (N, L, L), shared by heads

    # ---- attention: short per-head loop; heavy temporaries die per head ----
    scale = 1.0 / math.sqrt(DH)
    ctx_heads = []
    for h in range(H):
        lo, hi = h * DH, (h + 1) * DH
        qh = q_all[:, lo:hi].reshape(N, L, DH)
        kh = k_all[:, lo:hi].reshape(N, L, DH)
        vh = v_all[:, lo:hi].reshape(N, L, DH)
        s = jnp.einsum('bqd,bkd->bqk', _bf16(qh), _bf16(kh),
                       preferred_element_type=jnp.float32) * scale + neg   # (N, L, L)
        # manual softmax: exp on EUP, reciprocal on EUP (approx), no VPU divide
        s_max = jnp.max(s, axis=-1, keepdims=True)
        p = jnp.exp(s - s_max)
        denom = jnp.sum(p, axis=-1, keepdims=True)
        p = p * pl.reciprocal(denom, approx=True)
        ctx = jnp.einsum('bqk,bkd->bqd', _bf16(p), _bf16(vh),
                         preferred_element_type=jnp.float32)               # (N, L, DH)
        ctx_heads.append(ctx.reshape(NL, DH))

    # lane-concat heads -> (NL, D); head reduction done by a single K=D matmul
    ctx_all = jnp.concatenate(ctx_heads, axis=-1)                          # (NL, D)
    att = jnp.dot(_bf16(ctx_all), _bf16(wo),
                  preferred_element_type=jnp.float32) + bo                 # (NL, D)

    # ---- rand-gated residual + LayerNorm (scalars from SMEM) ----
    r = rands_ref[0]
    h1 = _layer_norm(r * x + (1.0 - r) * att, gamma, beta)

    # ---- Intermediate MLP: Linear -> GELU(tanh, EUP) -> Linear ----
    inter = jax.nn.gelu(
        jnp.dot(_bf16(h1), _bf16(w1), preferred_element_type=jnp.float32) + b1,
        approximate=True)
    mlp = jnp.dot(_bf16(inter), _bf16(w2),
                  preferred_element_type=jnp.float32) + b2

    # ---- rand_z-gated residual + (shared) LayerNorm ----
    rz = rands_ref[1]
    out_ref[...] = _layer_norm(rz * h1 + (1.0 - rz) * mlp, gamma, beta)


def pack_weight_slab(params):
    """Pack all weights/biases into one lane-dense (SLAB_ROWS, 128) f32 slab."""
    wqkv = jnp.concatenate([params["wq"], params["wk"], params["wv"]], axis=1)  # (D, 3D)
    bqkv = jnp.concatenate([params["bq"], params["bk"], params["bv"]], axis=1)  # (1, 3D)
    vec_row = jnp.concatenate([params["gamma"], params["beta"],
                               params["bo"], params["b2"]], axis=1)             # (1, 4D)
    slab = jnp.zeros((SLAB_ROWS, SLAB_COLS), jnp.float32)
    slab = slab.at[ROW_WQKV:ROW_WQKV + D, 0:3 * D].set(wqkv)
    slab = slab.at[ROW_WO:ROW_WO + D, 0:D].set(params["wo"])
    slab = slab.at[ROW_W1:ROW_W1 + D, 0:INTER].set(params["w1"])
    slab = slab.at[ROW_W2:ROW_W2 + INTER, 0:D].set(params["w2"])
    slab = slab.at[ROW_BQKV, 0:3 * D].set(bqkv[0])
    slab = slab.at[ROW_B1, 0:INTER].set(params["b1"][0])
    slab = slab.at[ROW_VEC, 0:4 * D].set(vec_row[0])
    return slab


def encoder_layer(hidden_states, attention_mask, params):
    n, seq, dim = hidden_states.shape
    assert (n, seq, dim) == (N, L, D)

    slab = pack_weight_slab(params)                                   # one weight DMA
    rands = jnp.concatenate([params["rand"], params["rand_z"]])       # (2,) SMEM scalars
    x_flat = hidden_states.reshape(n * seq, dim)                      # batch -> sublanes

    out_flat = pl.pallas_call(
        encoder_layer_kernel,
        out_shape=jax.ShapeDtypeStruct((n * seq, dim), jnp.float32),
        grid=(1,),                                                    # single step: whole toy problem
        in_specs=[
            pl.BlockSpec((n * seq, dim), lambda i: (0, 0)),           # hidden states (flattened)
            pl.BlockSpec((n, seq), lambda i: (0, 0)),                 # (N, L) pad mask
            pl.BlockSpec((SLAB_ROWS, SLAB_COLS), lambda i: (0, 0)),   # packed weight slab
            pl.BlockSpec(memory_space=pltpu.MemorySpace.SMEM),        # rand / rand_z scalars
        ],
        out_specs=pl.BlockSpec((n * seq, dim), lambda i: (0, 0)),
        compiler_params=pltpu.CompilerParams(
            dimension_semantics=("arbitrary",)),
    )(x_flat, attention_mask, slab, rands)

    return out_flat.reshape(n, seq, dim)


def init_params(key):
    ks = jax.random.split(key, 8)
    std = 0.02
    return {
        "wq": jax.random.normal(ks[0], (D, D), jnp.float32) * std,
        "bq": jnp.zeros((1, D), jnp.float32),
        "wk": jax.random.normal(ks[1], (D, D), jnp.float32) * std,
        "bk": jnp.zeros((1, D), jnp.float32),
        "wv": jax.random.normal(ks[2], (D, D), jnp.float32) * std,
        "bv": jnp.zeros((1, D), jnp.float32),
        "wo": jax.random.normal(ks[3], (D, D), jnp.float32) * std,
        "bo": jnp.zeros((1, D), jnp.float32),
        "gamma": jnp.ones((1, D), jnp.float32),
        "beta": jnp.zeros((1, D), jnp.float32),
        "w1": jax.random.normal(ks[4], (D, INTER), jnp.float32) * std,
        "b1": jnp.zeros((1, INTER), jnp.float32),
        "w2": jax.random.normal(ks[5], (INTER, D), jnp.float32) * std,
        "b2": jnp.zeros((1, D), jnp.float32),
        # self.rand / self.rand_z : torch.randn(1) scalars
        "rand": jax.random.normal(ks[6], (1,), jnp.float32),
        "rand_z": jax.random.normal(ks[7], (1,), jnp.float32),
    }


if __name__ == "__main__":
    key = jax.random.PRNGKey(0)
    k_hid, k_par = jax.random.split(key)

    hidden_states = jax.random.normal(k_hid, (N, L, D), jnp.float32)
    attention_mask = jnp.ones((N, L), jnp.float32)
    attention_mask = attention_mask.at[1, L - 3:].set(0.0)   # pad a few text tokens

    params = init_params(k_par)

    out = encoder_layer(hidden_states, attention_mask, params)
    jax.block_until_ready(out)
    assert out.shape == (N, L, D)
    assert bool(jnp.all(jnp.isfinite(out)))
    print("KERNEL_OK")
</pallas_src>

<mosaic_0001>
module attributes {stable_mosaic.version = 11 : i64} {
  func.func @encoder_layer_kernel(%arg0: i32, %arg1: memref<32x32xf32, #tpu.memory_space<vmem>>, %arg2: memref<2x16xf32, #tpu.memory_space<vmem>>, %arg3: memref<168x128xf32, #tpu.memory_space<vmem>>, %arg4: memref<2xf32, #tpu.memory_space<smem>>, %arg5: memref<32x32xf32, #tpu.memory_space<vmem>>) attributes {dimension_semantics = [#tpu.dimension_semantics<arbitrary>], iteration_bounds = array<i64: 1>, scalar_prefetch = 0 : i64, scratch_operands = 0 : i64, tpu.core_type = #tpu.core_type<tc>, window_params = [{pipeline_mode = #tpu.pipeline_mode<synchronous>, transform_indices = @transform_0, window_bounds = array<i64: 32, 32>}, {pipeline_mode = #tpu.pipeline_mode<synchronous>, transform_indices = @transform_1, window_bounds = array<i64: 2, 16>}, {pipeline_mode = #tpu.pipeline_mode<synchronous>, transform_indices = @transform_2, window_bounds = array<i64: 168, 128>}, {transform_indices = @transform_3, window_bounds = array<i64: 2>}, {pipeline_mode = #tpu.pipeline_mode<synchronous>, transform_indices = @transform_4, window_bounds = array<i64: 32, 32>}]} {
    %c0 = arith.constant 0 : index
    %c0_0 = arith.constant 0 : index
    %0 = vector.load %arg1[%c0, %c0_0] : memref<32x32xf32, #tpu.memory_space<vmem>>, vector<32x32xf32>
    %c0_1 = arith.constant 0 : index
    %c0_2 = arith.constant 0 : index
    %1 = vector.load %arg2[%c0_1, %c0_2] : memref<2x16xf32, #tpu.memory_space<vmem>>, vector<2x16xf32>
    %c0_3 = arith.constant 0 : index
    %c0_4 = arith.constant 0 : index
    %2 = vector.load %arg3[%c0_3, %c0_4] : memref<168x128xf32, #tpu.memory_space<vmem>>, vector<32x96xf32>
    %c32 = arith.constant 32 : index
    %c0_5 = arith.constant 0 : index
    %3 = vector.load %arg3[%c32, %c0_5] : memref<168x128xf32, #tpu.memory_space<vmem>>, vector<32x32xf32>
    %c64 = arith.constant 64 : index
    %c0_6 = arith.constant 0 : index
    %4 = vector.load %arg3[%c64, %c0_6] : memref<168x128xf32, #tpu.memory_space<vmem>>, vector<32x64xf32>
    %c96 = arith.constant 96 : index
    %c0_7 = arith.constant 0 : index
    %5 = vector.load %arg3[%c96, %c0_7] : memref<168x128xf32, #tpu.memory_space<vmem>>, vector<64x32xf32>
    %c160 = arith.constant 160 : index
    %c0_8 = arith.constant 0 : index
    %6 = vector.load %arg3[%c160, %c0_8] : memref<168x128xf32, #tpu.memory_space<vmem>>, vector<1x96xf32>
    %c161 = arith.constant 161 : index
    %c0_9 = arith.constant 0 : index
    %7 = vector.load %arg3[%c161, %c0_9] : memref<168x128xf32, #tpu.memory_space<vmem>>, vector<1x64xf32>
    %c162 = arith.constant 162 : index
    %c0_10 = arith.constant 0 : index
    %8 = vector.load %arg3[%c162, %c0_10] : memref<168x128xf32, #tpu.memory_space<vmem>>, vector<1x32xf32>
    %c162_11 = arith.constant 162 : index
    %c32_12 = arith.constant 32 : index
    %9 = vector.load %arg3[%c162_11, %c32_12] : memref<168x128xf32, #tpu.memory_space<vmem>>, vector<1x32xf32>
    %c162_13 = arith.constant 162 : index
    %c64_14 = arith.constant 64 : index
    %10 = vector.load %arg3[%c162_13, %c64_14] : memref<168x128xf32, #tpu.memory_space<vmem>>, vector<1x32xf32>
    %c162_15 = arith.constant 162 : index
    %c96_16 = arith.constant 96 : index
    %11 = vector.load %arg3[%c162_15, %c96_16] : memref<168x128xf32, #tpu.memory_space<vmem>>, vector<1x32xf32>
    %12 = arith.truncf %0 : vector<32x32xf32> to vector<32x32xbf16>
    %13 = arith.truncf %2 : vector<32x96xf32> to vector<32x96xbf16>
    %cst = arith.constant dense<0.000000e+00> : vector<32x96xf32>
    %14 = tpu.matmul %12, %13, %cst {dimension_numbers = #tpu.dot_dimension_numbers<[1], [0], [0], [1], [0, 0, 1, 1], [], []>} : vector<32x32xbf16>, vector<32x96xbf16>, vector<32x96xf32> -> vector<32x96xf32>
    %15 = vector.broadcast %6 : vector<1x96xf32> to vector<32x96xf32>
    %16 = arith.addf %14, %15 : vector<32x96xf32>
    %17 = vector.extract_strided_slice %16 {offsets = [0, 0], sizes = [32, 32], strides = [1, 1]} : vector<32x96xf32> to vector<32x32xf32>
    %18 = vector.extract_strided_slice %16 {offsets = [0, 32], sizes = [32, 32], strides = [1, 1]} : vector<32x96xf32> to vector<32x32xf32>
    %19 = vector.extract_strided_slice %16 {offsets = [0, 64], sizes = [32, 32], strides = [1, 1]} : vector<32x96xf32> to vector<32x32xf32>
    %20 = tpu.iota {dimensions = array<i32: 0>} : vector<16x16xi32>
    %21 = tpu.iota {dimensions = array<i32: 1>} : vector<16x16xi32>
    %c8_i32 = arith.constant 8 : i32
    %22 = vector.broadcast %c8_i32 : i32 to vector<16x16xi32>
    %23 = arith.cmpi slt, %21, %22 : vector<16x16xi32>
    %c8_i32_17 = arith.constant 8 : i32
    %24 = vector.broadcast %c8_i32_17 : i32 to vector<16x16xi32>
    %25 = arith.cmpi sge, %20, %24 : vector<16x16xi32>
    %c8_i32_18 = arith.constant 8 : i32
    %26 = vector.broadcast %c8_i32_18 : i32 to vector<16x16xi32>
    %27 = arith.cmpi sge, %21, %26 : vector<16x16xi32>
    %28 = arith.andi %25, %27 : vector<16x16xi1>
    %29 = arith.cmpi sle, %21, %20 : vector<16x16xi32>
    %30 = arith.andi %28, %29 : vector<16x16xi1>
    %31 = arith.ori %23, %30 : vector<16x16xi1>
    %cst_19 = arith.constant 1.000000e+00 : f32
    %cst_20 = arith.constant 0.000000e+00 : f32
    %32 = vector.broadcast %cst_19 : f32 to vector<16x16xf32>
    %33 = vector.broadcast %cst_20 : f32 to vector<16x16xf32>
    %34 = arith.select %31, %32, %33 : vector<16x16xi1>, vector<16x16xf32>
    %35 = vector.shape_cast %34 : vector<16x16xf32> to vector<1x16x16xf32>
    %36 = vector.shape_cast %1 : vector<2x16xf32> to vector<2x1x16xf32>
    %37 = vector.broadcast %35 : vector<1x16x16xf32> to vector<2x16x16xf32>
    %38 = vector.broadcast %36 : vector<2x1x16xf32> to vector<2x16x16xf32>
    %39 = arith.mulf %37, %38 : vector<2x16x16xf32>
    %cst_21 = arith.constant 1.000000e+00 : f32
    %40 = vector.broadcast %cst_21 : f32 to vector<2x16x16xf32>
    %41 = arith.subf %40, %39 : vector<2x16x16xf32>
    %cst_22 = arith.constant -1.000000e+04 : f32
    %42 = vector.broadcast %cst_22 : f32 to vector<2x16x16xf32>
    %43 = arith.mulf %41, %42 : vector<2x16x16xf32>
    %44 = vector.extract_strided_slice %17 {offsets = [0, 0], sizes = [32, 8], strides = [1, 1]} : vector<32x32xf32> to vector<32x8xf32>
    %45 = vector.shape_cast %44 : vector<32x8xf32> to vector<2x16x8xf32>
    %46 = vector.extract_strided_slice %18 {offsets = [0, 0], sizes = [32, 8], strides = [1, 1]} : vector<32x32xf32> to vector<32x8xf32>
    %47 = vector.shape_cast %46 : vector<32x8xf32> to vector<2x16x8xf32>
    %48 = vector.extract_strided_slice %19 {offsets = [0, 0], sizes = [32, 8], strides = [1, 1]} : vector<32x32xf32> to vector<32x8xf32>
    %49 = vector.shape_cast %48 : vector<32x8xf32> to vector<2x16x8xf32>
    %50 = arith.truncf %45 : vector<2x16x8xf32> to vector<2x16x8xbf16>
    %51 = arith.truncf %47 : vector<2x16x8xf32> to vector<2x16x8xbf16>
    "tpu.trace_start"() <{level = 10 : i32, message = "bqd,bkd->bqk"}> : () -> ()
    %cst_23 = arith.constant dense<0.000000e+00> : vector<2x16x16xf32>
    %52 = tpu.matmul %50, %51, %cst_23 {dimension_numbers = #tpu.dot_dimension_numbers<[2], [2], [1], [1], [0, 0, 0, 1, 1, 1], [0], [0]>} : vector<2x16x8xbf16>, vector<2x16x8xbf16>, vector<2x16x16xf32> -> vector<2x16x16xf32>
    "tpu.trace_stop"() : () -> ()
    %cst_24 = arith.constant 0.353553385 : f32
    %53 = vector.broadcast %cst_24 : f32 to vector<2x16x16xf32>
    %54 = arith.mulf %52, %53 : vector<2x16x16xf32>
    %55 = arith.addf %54, %43 : vector<2x16x16xf32>
    %cst_25 = arith.constant dense<0xFF800000> : vector<2x16xf32>
    %56 = vector.multi_reduction <maximumf>, %55, %cst_25 [2] : vector<2x16x16xf32> to vector<2x16xf32>
    %57 = vector.shape_cast %56 : vector<2x16xf32> to vector<2x16x1xf32>
    %58 = vector.broadcast %57 : vector<2x16x1xf32> to vector<2x16x16xf32>
    %59 = arith.subf %55, %58 : vector<2x16x16xf32>
    %60 = math.exp %59 : vector<2x16x16xf32>
    %cst_26 = arith.constant dense<0.000000e+00> : vector<2x16xf32>
    %61 = vector.multi_reduction <add>, %60, %cst_26 [2] : vector<2x16x16xf32> to vector<2x16xf32>
    %62 = vector.shape_cast %61 : vector<2x16xf32> to vector<2x16x1xf32>
    %63 = tpu.reciprocal %62 {approx = true} : vector<2x16x1xf32> -> vector<2x16x1xf32>
    %64 = vector.broadcast %63 : vector<2x16x1xf32> to vector<2x16x16xf32>
    %65 = arith.mulf %60, %64 : vector<2x16x16xf32>
    %66 = arith.truncf %65 : vector<2x16x16xf32> to vector<2x16x16xbf16>
    %67 = arith.truncf %49 : vector<2x16x8xf32> to vector<2x16x8xbf16>
    "tpu.trace_start"() <{level = 10 : i32, message = "bqk,bkd->bqd"}> : () -> ()
    %cst_27 = arith.constant dense<0.000000e+00> : vector<2x16x8xf32>
    %68 = tpu.matmul %66, %67, %cst_27 {dimension_numbers = #tpu.dot_dimension_numbers<[2], [1], [1], [2], [0, 0, 0, 1, 1, 2], [0], [0]>} : vector<2x16x16xbf16>, vector<2x16x8xbf16>, vector<2x16x8xf32> -> vector<2x16x8xf32>
    "tpu.trace_stop"() : () -> ()
    %69 = vector.shape_cast %68 : vector<2x16x8xf32> to vector<32x8xf32>
    %70 = vector.extract_strided_slice %17 {offsets = [0, 8], sizes = [32, 8], strides = [1, 1]} : vector<32x32xf32> to vector<32x8xf32>
    %71 = vector.shape_cast %70 : vector<32x8xf32> to vector<2x16x8xf32>
    %72 = vector.extract_strided_slice %18 {offsets = [0, 8], sizes = [32, 8], strides = [1, 1]} : vector<32x32xf32> to vector<32x8xf32>
    %73 = vector.shape_cast %72 : vector<32x8xf32> to vector<2x16x8xf32>
    %74 = vector.extract_strided_slice %19 {offsets = [0, 8], sizes = [32, 8], strides = [1, 1]} : vector<32x32xf32> to vector<32x8xf32>
    %75 = vector.shape_cast %74 : vector<32x8xf32> to vector<2x16x8xf32>
    %76 = arith.truncf %71 : vector<2x16x8xf32> to vector<2x16x8xbf16>
    %77 = arith.truncf %73 : vector<2x16x8xf32> to vector<2x16x8xbf16>
    "tpu.trace_start"() <{level = 10 : i32, message = "bqd,bkd->bqk"}> : () -> ()
    %cst_28 = arith.constant dense<0.000000e+00> : vector<2x16x16xf32>
    %78 = tpu.matmul %76, %77, %cst_28 {dimension_numbers = #tpu.dot_dimension_numbers<[2], [2], [1], [1], [0, 0, 0, 1, 1, 1], [0], [0]>} : vector<2x16x8xbf16>, vector<2x16x8xbf16>, vector<2x16x16xf32> -> vector<2x16x16xf32>
    "tpu.trace_stop"() : () -> ()
    %cst_29 = arith.constant 0.353553385 : f32
    %79 = vector.broadcast %cst_29 : f32 to vector<2x16x16xf32>
    %80 = arith.mulf %78, %79 : vector<2x16x16xf32>
    %81 = arith.addf %80, %43 : vector<2x16x16xf32>
    %cst_30 = arith.constant dense<0xFF800000> : vector<2x16xf32>
    %82 = vector.multi_reduction <maximumf>, %81, %cst_30 [2] : vector<2x16x16xf32> to vector<2x16xf32>
    %83 = vector.shape_cast %82 : vector<2x16xf32> to vector<2x16x1xf32>
    %84 = vector.broadcast %83 : vector<2x16x1xf32> to vector<2x16x16xf32>
    %85 = arith.subf %81, %84 : vector<2x16x16xf32>
    %86 = math.exp %85 : vector<2x16x16xf32>
    %cst_31 = arith.constant dense<0.000000e+00> : vector<2x16xf32>
    %87 = vector.multi_reduction <add>, %86, %cst_31 [2] : vector<2x16x16xf32> to vector<2x16xf32>
    %88 = vector.shape_cast %87 : vector<2x16xf32> to vector<2x16x1xf32>
    %89 = tpu.reciprocal %88 {approx = true} : vector<2x16x1xf32> -> vector<2x16x1xf32>
    %90 = vector.broadcast %89 : vector<2x16x1xf32> to vector<2x16x16xf32>
    %91 = arith.mulf %86, %90 : vector<2x16x16xf32>
    %92 = arith.truncf %91 : vector<2x16x16xf32> to vector<2x16x16xbf16>
    %93 = arith.truncf %75 : vector<2x16x8xf32> to vector<2x16x8xbf16>
    "tpu.trace_start"() <{level = 10 : i32, message = "bqk,bkd->bqd"}> : () -> ()
    %cst_32 = arith.constant dense<0.000000e+00> : vector<2x16x8xf32>
    %94 = tpu.matmul %92, %93, %cst_32 {dimension_numbers = #tpu.dot_dimension_numbers<[2], [1], [1], [2], [0, 0, 0, 1, 1, 2], [0], [0]>} : vector<2x16x16xbf16>, vector<2x16x8xbf16>, vector<2x16x8xf32> -> vector<2x16x8xf32>
    "tpu.trace_stop"() : () -> ()
    %95 = vector.shape_cast %94 : vector<2x16x8xf32> to vector<32x8xf32>
    %96 = vector.extract_strided_slice %17 {offsets = [0, 16], sizes = [32, 8], strides = [1, 1]} : vector<32x32xf32> to vector<32x8xf32>
    %97 = vector.shape_cast %96 : vector<32x8xf32> to vector<2x16x8xf32>
    %98 = vector.extract_strided_slice %18 {offsets = [0, 16], sizes = [32, 8], strides = [1, 1]} : vector<32x32xf32> to vector<32x8xf32>
    %99 = vector.shape_cast %98 : vector<32x8xf32> to vector<2x16x8xf32>
    %100 = vector.extract_strided_slice %19 {offsets = [0, 16], sizes = [32, 8], strides = [1, 1]} : vector<32x32xf32> to vector<32x8xf32>
    %101 = vector.shape_cast %100 : vector<32x8xf32> to vector<2x16x8xf32>
    %102 = arith.truncf %97 : vector<2x16x8xf32> to vector<2x16x8xbf16>
    %103 = arith.truncf %99 : vector<2x16x8xf32> to vector<2x16x8xbf16>
    "tpu.trace_start"() <{level = 10 : i32, message = "bqd,bkd->bqk"}> : () -> ()
    %cst_33 = arith.constant dense<0.000000e+00> : vector<2x16x16xf32>
    %104 = tpu.matmul %102, %103, %cst_33 {dimension_numbers = #tpu.dot_dimension_numbers<[2], [2], [1], [1], [0, 0, 0, 1, 1, 1], [0], [0]>} : vector<2x16x8xbf16>, vector<2x16x8xbf16>, vector<2x16x16xf32> -> vector<2x16x16xf32>
    "tpu.trace_stop"() : () -> ()
    %cst_34 = arith.constant 0.353553385 : f32
    %105 = vector.broadcast %cst_34 : f32 to vector<2x16x16xf32>
    %106 = arith.mulf %104, %105 : vector<2x16x16xf32>
    %107 = arith.addf %106, %43 : vector<2x16x16xf32>
    %cst_35 = arith.constant dense<0xFF800000> : vector<2x16xf32>
    %108 = vector.multi_reduction <maximumf>, %107, %cst_35 [2] : vector<2x16x16xf32> to vector<2x16xf32>
    %109 = vector.shape_cast %108 : vector<2x16xf32> to vector<2x16x1xf32>
    %110 = vector.broadcast %109 : vector<2x16x1xf32> to vector<2x16x16xf32>
    %111 = arith.subf %107, %110 : vector<2x16x16xf32>
    %112 = math.exp %111 : vector<2x16x16xf32>
    %cst_36 = arith.constant dense<0.000000e+00> : vector<2x16xf32>
    %113 = vector.multi_reduction <add>, %112, %cst_36 [2] : vector<2x16x16xf32> to vector<2x16xf32>
    %114 = vector.shape_cast %113 : vector<2x16xf32> to vector<2x16x1xf32>
    %115 = tpu.reciprocal %114 {approx = true} : vector<2x16x1xf32> -> vector<2x16x1xf32>
    %116 = vector.broadcast %115 : vector<2x16x1xf32> to vector<2x16x16xf32>
    %117 = arith.mulf %112, %116 : vector<2x16x16xf32>
    %118 = arith.truncf %117 : vector<2x16x16xf32> to vector<2x16x16xbf16>
    %119 = arith.truncf %101 : vector<2x16x8xf32> to vector<2x16x8xbf16>
    "tpu.trace_start"() <{level = 10 : i32, message = "bqk,bkd->bqd"}> : () -> ()
    %cst_37 = arith.constant dense<0.000000e+00> : vector<2x16x8xf32>
    %120 = tpu.matmul %118, %119, %cst_37 {dimension_numbers = #tpu.dot_dimension_numbers<[2], [1], [1], [2], [0, 0, 0, 1, 1, 2], [0], [0]>} : vector<2x16x16xbf16>, vector<2x16x8xbf16>, vector<2x16x8xf32> -> vector<2x16x8xf32>
    "tpu.trace_stop"() : () -> ()
    %121 = vector.shape_cast %120 : vector<2x16x8xf32> to vector<32x8xf32>
    %122 = vector.extract_strided_slice %17 {offsets = [0, 24], sizes = [32, 8], strides = [1, 1]} : vector<32x32xf32> to vector<32x8xf32>
    %123 = vector.shape_cast %122 : vector<32x8xf32> to vector<2x16x8xf32>
    %124 = vector.extract_strided_slice %18 {offsets = [0, 24], sizes = [32, 8], strides = [1, 1]} : vector<32x32xf32> to vector<32x8xf32>
    %125 = vector.shape_cast %124 : vector<32x8xf32> to vector<2x16x8xf32>
    %126 = vector.extract_strided_slice %19 {offsets = [0, 24], sizes = [32, 8], strides = [1, 1]} : vector<32x32xf32> to vector<32x8xf32>
    %127 = vector.shape_cast %126 : vector<32x8xf32> to vector<2x16x8xf32>
    %128 = arith.truncf %123 : vector<2x16x8xf32> to vector<2x16x8xbf16>
    %129 = arith.truncf %125 : vector<2x16x8xf32> to vector<2x16x8xbf16>
    "tpu.trace_start"() <{level = 10 : i32, message = "bqd,bkd->bqk"}> : () -> ()
    %cst_38 = arith.constant dense<0.000000e+00> : vector<2x16x16xf32>
    %130 = tpu.matmul %128, %129, %cst_38 {dimension_numbers = #tpu.dot_dimension_numbers<[2], [2], [1], [1], [0, 0, 0, 1, 1, 1], [0], [0]>} : vector<2x16x8xbf16>, vector<2x16x8xbf16>, vector<2x16x16xf32> -> vector<2x16x16xf32>
    "tpu.trace_stop"() : () -> ()
    %cst_39 = arith.constant 0.353553385 : f32
    %131 = vector.broadcast %cst_39 : f32 to vector<2x16x16xf32>
    %132 = arith.mulf %130, %131 : vector<2x16x16xf32>
    %133 = arith.addf %132, %43 : vector<2x16x16xf32>
    %cst_40 = arith.constant dense<0xFF800000> : vector<2x16xf32>
    %134 = vector.multi_reduction <maximumf>, %133, %cst_40 [2] : vector<2x16x16xf32> to vector<2x16xf32>
    %135 = vector.shape_cast %134 : vector<2x16xf32> to vector<2x16x1xf32>
    %136 = vector.broadcast %135 : vector<2x16x1xf32> to vector<2x16x16xf32>
    %137 = arith.subf %133, %136 : vector<2x16x16xf32>
    %138 = math.exp %137 : vector<2x16x16xf32>
    %cst_41 = arith.constant dense<0.000000e+00> : vector<2x16xf32>
    %139 = vector.multi_reduction <add>, %138, %cst_41 [2] : vector<2x16x16xf32> to vector<2x16xf32>
    %140 = vector.shape_cast %139 : vector<2x16xf32> to vector<2x16x1xf32>
    %141 = tpu.reciprocal %140 {approx = true} : vector<2x16x1xf32> -> vector<2x16x1xf32>
    %142 = vector.broadcast %141 : vector<2x16x1xf32> to vector<2x16x16xf32>
    %143 = arith.mulf %138, %142 : vector<2x16x16xf32>
    %144 = arith.truncf %143 : vector<2x16x16xf32> to vector<2x16x16xbf16>
    %145 = arith.truncf %127 : vector<2x16x8xf32> to vector<2x16x8xbf16>
    "tpu.trace_start"() <{level = 10 : i32, message = "bqk,bkd->bqd"}> : () -> ()
    %cst_42 = arith.constant dense<0.000000e+00> : vector<2x16x8xf32>
    %146 = tpu.matmul %144, %145, %cst_42 {dimension_numbers = #tpu.dot_dimension_numbers<[2], [1], [1], [2], [0, 0, 0, 1, 1, 2], [0], [0]>} : vector<2x16x16xbf16>, vector<2x16x8xbf16>, vector<2x16x8xf32> -> vector<2x16x8xf32>
    "tpu.trace_stop"() : () -> ()
    %147 = vector.shape_cast %146 : vector<2x16x8xf32> to vector<32x8xf32>
    %148 = tpu.concatenate %69, %95, %121, %147 in 1 : vector<32x8xf32>, vector<32x8xf32>, vector<32x8xf32>, vector<32x8xf32> -> vector<32x32xf32>
    %149 = arith.truncf %148 : vector<32x32xf32> to vector<32x32xbf16>
    %150 = arith.truncf %3 : vector<32x32xf32> to vector<32x32xbf16>
    %cst_43 = arith.constant dense<0.000000e+00> : vector<32x32xf32>
    %151 = tpu.matmul %149, %150, %cst_43 {dimension_numbers = #tpu.dot_dimension_numbers<[1], [0], [0], [1], [0, 0, 1, 1], [], []>} : vector<32x32xbf16>, vector<32x32xbf16>, vector<32x32xf32> -> vector<32x32xf32>
    %152 = vector.broadcast %10 : vector<1x32xf32> to vector<32x32xf32>
    %153 = arith.addf %151, %152 : vector<32x32xf32>
    %c0_44 = arith.constant 0 : index
    %154 = memref.load %arg4[%c0_44] : memref<2xf32, #tpu.memory_space<smem>>
    %155 = vector.broadcast %154 : f32 to vector<32x32xf32>
    %156 = arith.mulf %155, %0 : vector<32x32xf32>
    %cst_45 = arith.constant 1.000000e+00 : f32
    %157 = arith.subf %cst_45, %154 : f32
    %158 = vector.broadcast %157 : f32 to vector<32x32xf32>
    %159 = arith.mulf %158, %153 : vector<32x32xf32>
    %160 = arith.addf %156, %159 : vector<32x32xf32>
    %cst_46 = arith.constant dense<0.000000e+00> : vector<32xf32>
    %161 = vector.multi_reduction <add>, %160, %cst_46 [1] : vector<32x32xf32> to vector<32xf32>
    %162 = vector.shape_cast %161 : vector<32xf32> to vector<32x1xf32>
    %cst_47 = arith.constant 3.200000e+01 : f32
    %163 = vector.broadcast %cst_47 : f32 to vector<32x1xf32>
    %164 = arith.divf %162, %163 : vector<32x1xf32>
    %165 = vector.broadcast %164 : vector<32x1xf32> to vector<32x32xf32>
    %166 = arith.subf %160, %165 : vector<32x32xf32>
    %167 = arith.mulf %166, %166 : vector<32x32xf32>
    %cst_48 = arith.constant dense<0.000000e+00> : vector<32xf32>
    %168 = vector.multi_reduction <add>, %167, %cst_48 [1] : vector<32x32xf32> to vector<32xf32>
    %169 = vector.shape_cast %168 : vector<32xf32> to vector<32x1xf32>
    %cst_49 = arith.constant 3.200000e+01 : f32
    %170 = vector.broadcast %cst_49 : f32 to vector<32x1xf32>
    %171 = arith.divf %169, %170 : vector<32x1xf32>
    %172 = vector.broadcast %164 : vector<32x1xf32> to vector<32x32xf32>
    %173 = arith.subf %160, %172 : vector<32x32xf32>
    %cst_50 = arith.constant 9.99999996E-13 : f32
    %174 = vector.broadcast %cst_50 : f32 to vector<32x1xf32>
    %175 = arith.addf %171, %174 : vector<32x1xf32>
    %176 = math.rsqrt %175 : vector<32x1xf32>
    %177 = vector.broadcast %176 : vector<32x1xf32> to vector<32x32xf32>
    %178 = arith.mulf %173, %177 : vector<32x32xf32>
    %179 = vector.broadcast %8 : vector<1x32xf32> to vector<32x32xf32>
    %180 = arith.mulf %178, %179 : vector<32x32xf32>
    %181 = vector.broadcast %9 : vector<1x32xf32> to vector<32x32xf32>
    %182 = arith.addf %180, %181 : vector<32x32xf32>
    %183 = arith.truncf %182 : vector<32x32xf32> to vector<32x32xbf16>
    %184 = arith.truncf %4 : vector<32x64xf32> to vector<32x64xbf16>
    %cst_51 = arith.constant dense<0.000000e+00> : vector<32x64xf32>
    %185 = tpu.matmul %183, %184, %cst_51 {dimension_numbers = #tpu.dot_dimension_numbers<[1], [0], [0], [1], [0, 0, 1, 1], [], []>} : vector<32x32xbf16>, vector<32x64xbf16>, vector<32x64xf32> -> vector<32x64xf32>
    %186 = vector.broadcast %7 : vector<1x64xf32> to vector<32x64xf32>
    %187 = arith.addf %185, %186 : vector<32x64xf32>
    %188 = arith.mulf %187, %187 : vector<32x64xf32>
    %189 = arith.mulf %187, %188 : vector<32x64xf32>
    %cst_52 = arith.constant 4.471500e-02 : f32
    %190 = vector.broadcast %cst_52 : f32 to vector<32x64xf32>
    %191 = arith.mulf %190, %189 : vector<32x64xf32>
    %192 = arith.addf %187, %191 : vector<32x64xf32>
    %cst_53 = arith.constant 0.797884583 : f32
    %193 = vector.broadcast %cst_53 : f32 to vector<32x64xf32>
    %194 = arith.mulf %193, %192 : vector<32x64xf32>
    %195 = math.tanh %194 : vector<32x64xf32>
    %cst_54 = arith.constant 1.000000e+00 : f32
    %196 = vector.broadcast %cst_54 : f32 to vector<32x64xf32>
    %197 = arith.addf %196, %195 : vector<32x64xf32>
    %cst_55 = arith.constant 5.000000e-01 : f32
    %198 = vector.broadcast %cst_55 : f32 to vector<32x64xf32>
    %199 = arith.mulf %198, %197 : vector<32x64xf32>
    %200 = arith.mulf %187, %199 : vector<32x64xf32>
    %201 = arith.truncf %200 : vector<32x64xf32> to vector<32x64xbf16>
    %202 = arith.truncf %5 : vector<64x32xf32> to vector<64x32xbf16>
    %cst_56 = arith.constant dense<0.000000e+00> : vector<32x32xf32>
    %203 = tpu.matmul %201, %202, %cst_56 {dimension_numbers = #tpu.dot_dimension_numbers<[1], [0], [0], [1], [0, 0, 1, 1], [], []>} : vector<32x64xbf16>, vector<64x32xbf16>, vector<32x32xf32> -> vector<32x32xf32>
    %204 = vector.broadcast %11 : vector<1x32xf32> to vector<32x32xf32>
    %205 = arith.addf %203, %204 : vector<32x32xf32>
    %c1 = arith.constant 1 : index
    %206 = memref.load %arg4[%c1] : memref<2xf32, #tpu.memory_space<smem>>
    %207 = vector.broadcast %206 : f32 to vector<32x32xf32>
    %208 = arith.mulf %207, %182 : vector<32x32xf32>
    %cst_57 = arith.constant 1.000000e+00 : f32
    %209 = arith.subf %cst_57, %206 : f32
    %210 = vector.broadcast %209 : f32 to vector<32x32xf32>
    %211 = arith.mulf %210, %205 : vector<32x32xf32>
    %212 = arith.addf %208, %211 : vector<32x32xf32>
    %cst_58 = arith.constant dense<0.000000e+00> : vector<32xf32>
    %213 = vector.multi_reduction <add>, %212, %cst_58 [1] : vector<32x32xf32> to vector<32xf32>
    %214 = vector.shape_cast %213 : vector<32xf32> to vector<32x1xf32>
    %cst_59 = arith.constant 3.200000e+01 : f32
    %215 = vector.broadcast %cst_59 : f32 to vector<32x1xf32>
    %216 = arith.divf %214, %215 : vector<32x1xf32>
    %217 = vector.broadcast %216 : vector<32x1xf32> to vector<32x32xf32>
    %218 = arith.subf %212, %217 : vector<32x32xf32>
    %219 = arith.mulf %218, %218 : vector<32x32xf32>
    %cst_60 = arith.constant dense<0.000000e+00> : vector<32xf32>
    %220 = vector.multi_reduction <add>, %219, %cst_60 [1] : vector<32x32xf32> to vector<32xf32>
    %221 = vector.shape_cast %220 : vector<32xf32> to vector<32x1xf32>
    %cst_61 = arith.constant 3.200000e+01 : f32
    %222 = vector.broadcast %cst_61 : f32 to vector<32x1xf32>
    %223 = arith.divf %221, %222 : vector<32x1xf32>
    %224 = vector.broadcast %216 : vector<32x1xf32> to vector<32x32xf32>
    %225 = arith.subf %212, %224 : vector<32x32xf32>
    %cst_62 = arith.constant 9.99999996E-13 : f32
    %226 = vector.broadcast %cst_62 : f32 to vector<32x1xf32>
    %227 = arith.addf %223, %226 : vector<32x1xf32>
    %228 = math.rsqrt %227 : vector<32x1xf32>
    %229 = vector.broadcast %228 : vector<32x1xf32> to vector<32x32xf32>
    %230 = arith.mulf %225, %229 : vector<32x32xf32>
    %231 = vector.broadcast %8 : vector<1x32xf32> to vector<32x32xf32>
    %232 = arith.mulf %230, %231 : vector<32x32xf32>
    %233 = vector.broadcast %9 : vector<1x32xf32> to vector<32x32xf32>
    %234 = arith.addf %232, %233 : vector<32x32xf32>
    %c0_63 = arith.constant 0 : index
    %c0_64 = arith.constant 0 : index
    %235 = vector.load %arg5[%c0_63, %c0_64] : memref<32x32xf32, #tpu.memory_space<vmem>>, vector<32x32xf32>
    tpu.vector_store %arg5[%c0_63, %c0_64], %234 {strides = array<i32>} : memref<32x32xf32, #tpu.memory_space<vmem>>, vector<32x32xf32>,
    return
  }
  func.func @transform_0(%arg0: i32) -> (i32, i32) {
    %c0_i32 = arith.constant 0 : i32
    %c0_i32_0 = arith.constant 0 : i32
    %c0_i32_1 = arith.constant 0 : i32
    return %c0_i32, %c0_i32_0 : i32, i32
  }
  func.func @transform_1(%arg0: i32) -> (i32, i32) {
    %c0_i32 = arith.constant 0 : i32
    %c0_i32_0 = arith.constant 0 : i32
    %c0_i32_1 = arith.constant 0 : i32
    return %c0_i32, %c0_i32_0 : i32, i32
  }
  func.func @transform_2(%arg0: i32) -> (i32, i32) {
    %c0_i32 = arith.constant 0 : i32
    %c0_i32_0 = arith.constant 0 : i32
    %c0_i32_1 = arith.constant 0 : i32
    return %c0_i32, %c0_i32_0 : i32, i32
  }
  func.func @transform_3(%arg0: i32) -> i32 {
    %c0_i32 = arith.constant 0 : i32
    %c0_i32_0 = arith.constant 0 : i32
    return %c0_i32 : i32
  }
  func.func @transform_4(%arg0: i32) -> (i32, i32) {
    %c0_i32 = arith.constant 0 : i32
    %c0_i32_0 = arith.constant 0 : i32
    %c0_i32_1 = arith.constant 0 : i32
    return %c0_i32, %c0_i32_0 : i32, i32
  }
}

</mosaic_0001>

<bundles_post_ra>
// kernel: tpu_custom_call.1
= control target key start
LH: loop header
LB: loop body
LE: loop exit
PB: predicated region body
PF: predicated region fallthrough
CT: control target
= control target key end

     0   :  { %9 = vsyncpa [#allocation3], 0  ;;  %s2519_s0 = inlined_call_operand.hbm [shape: f32[32,32], index: 0, kind: input, shape index: {}]   ;;  %s2520_s1 = inlined_call_operand.vmem [shape: f32[2,16], index: 1, kind: input, shape index: {}]   ;;  %s2521_s2 = inlined_call_operand.hbm [shape: f32[168,128], index: 2, kind: input, shape index: {}]   ;;  %s2522_s3 = inlined_call_operand.vmem [shape: f32[2], index: 3, kind: input, shape index: {}]   ;;  %s2523_s4 = inlined_call_operand.hbm [shape: f32[32,32], index: 4, kind: output, shape index: {}]  }
   0x1   :  { %10 = vsyncpa [#allocation7], 0 }
   0x2   :  { %11 = vsyncpa [#allocation5], 0 }
   0x3   :  { %12 = vsyncpa [#allocation4], 0  ;;  %s2131_s15 = smov [#allocation2]   ;;  %s2045_s19 = scalar_lea.hbm %s2519_s0, 512 }
   0x4   :  { %s18_s16 = sshll.u32 %s2131_s15, 4  ;;  %p2046_p0 = scmp.ne.s32.totalorder %s2519_s0, %s2045_s19  ;;  %s19_s16 = int_to_ptr.vmem [resolvable:$true] %s18_s16 }
   0x5   :  { %p2049_p1 = scmp.lt.u32.totalorder %s2045_s19, %s2519_s0 }
   0x7   :  { %p2051_p2 = pnand %p2049_p1, %p2046_p0 }
   0x9   :  { %2054 = shalt.err (!%p2051_p2)
}
   0xa   :  { %s2055_s24 = scalar_lea.vmem %s19_s16, 512  ;;  %p2060_p4 = scmp.lt.s32.totalorder %s19_s16, %s19_s16 }
   0xb   :  { %p2056_p3 = scmp.ne.s32.totalorder %s19_s16, %s2055_s24  ;;  %p2061_p5 = scmp.lt.s32.totalorder %s2055_s24, %s2055_s24 }
   0xd   :  { %p2062_p6 = por %p2061_p5, %p2060_p4 }
   0xf   :  { %p2063_p7 = pnand %p2062_p6, %p2056_p3 }
  0x11   :  { %2066 = shalt.err (!%p2063_p7)
}
  0x12   :  { %s2132_s25 = smov 128   ;;  %s2133_s26 = smov 8  }
  0x13   :  { %24 = dma.hbm_to_vmem [thread:$0]  %s2519_s0, 512, %s19_s16, [#allocation3], %s2132_s25, %s2132_s25, %s2133_s26  }
  0x14   :  { %s2134_s29 = smov [#allocation6]   ;;  %s45_s7 = sshll.u32 %s2522_s3, 4  ;;  %s46_s7 = int_to_ptr.vmem [resolvable:$true] %s45_s7 }
  0x15   :  { %s32_s30 = sshll.u32 %s2134_s29, 4  ;;  %s2067_s10 = scalar_lea.hbm %s2521_s2, 2688  ;;  %s33_s30 = int_to_ptr.vmem [resolvable:$true] %s32_s30 }
  0x16   :  { %p2068_p8 = scmp.ne.s32.totalorder %s2521_s2, %s2067_s10  ;;  %p2071_p9 = scmp.lt.u32.totalorder %s2067_s10, %s2521_s2 }
  0x18   :  { %p2073_p10 = pnand %p2071_p9, %p2068_p8 }
  0x1a   :  { %2076 = shalt.err (!%p2073_p10)
}
  0x1b   :  { %s2077_s0 = scalar_lea.vmem %s33_s30, 2688  ;;  %p2082_p12 = scmp.lt.s32.totalorder %s33_s30, %s33_s30 }
  0x1c   :  { %p2078_p11 = scmp.ne.s32.totalorder %s33_s30, %s2077_s0  ;;  %p2083_p13 = scmp.lt.s32.totalorder %s2077_s0, %s2077_s0 }
  0x1e   :  { %p2084_p0 = por %p2083_p13, %p2082_p12 }
  0x20   :  { %p2085_p1 = pnand %p2084_p0, %p2078_p11 }
  0x22   :  { %2088 = shalt.err (!%p2085_p1)
}
  0x23   :  { %38 = dma.hbm_to_vmem [thread:$0]  %s2521_s2, 2688, %s33_s30, [#allocation7], %s2132_s25, %s2132_s25, %s2133_s26  }
  0x24   :  { %s2089_s16 = scalar_lea.vmem %s46_s7, 16  ;;  %p2094_p3 = scmp.lt.s32.totalorder %s46_s7, %s46_s7 }
  0x25   :  { %p2090_p2 = scmp.ne.s32.totalorder %s46_s7, %s2089_s16  ;;  %p2095_p4 = scmp.lt.s32.totalorder %s2089_s16, %s2089_s16 }
  0x27   :  { %p2096_p5 = por %p2095_p4, %p2094_p3 }
  0x29   :  { %p2097_p6 = pnand %p2096_p5, %p2090_p2 }
  0x2b   :  { %2100 = shalt.err (!%p2097_p6)
}
  0x2c   :  { %s2135_s17 = smov [#allocation8]  }
  0x2d   :  { %48 = dma.vmem_to_smem %s46_s7, 16, %s2135_s17, [#allocation5]  }
  0x2e   :  { %2123 = dma.done.wait [#allocation3], 512  }
  0x2f   :  { %2124 = vsyncadd [#allocation3], 4294966784 }
  0x30   :  { %2125 = dma.done.wait [#allocation7], 2688  }
  0x31   :  { %2126 = vsyncadd [#allocation7], 4294964608 }
  0x32   :  { %2127 = dma.done.wait [#allocation5], 16  }
  0x33   :  { %2128 = vsyncadd [#allocation5], 4294967280 }
  0x34   :  { %58 = sfence }
  0x35   :  { %v65_v0 = vld [vmem:[#allocation6] sm:$0xff]  ;;  %v66_v1 = vld [vmem:[#allocation6 + $0x8] sm:$0xff]  ;;  %v67_v2 = vld [vmem:[#allocation6 + $0x10] sm:$0xff]  ;;  %vm96_vm0 = vcmask 261120   ;;  %v2136_v12 = vmov 0.0   ;;  %vm2137_vm1 = vmmov 0   ;;  %v152_v28 = vlaneseq }
  0x36   :  { %v90_v3 = vpack.c.bf16 %v66_v1, %v65_v0  ;;  %v68_v4 = vld [vmem:[#allocation6 + $0x18] sm:$0xff]  ;;  %v60_v5 = vld [vmem:[#allocation2] sm:$0xff]  ;;  %v61_v6 = vld [vmem:[#allocation2 + $0x8] sm:$0xff]  ;;  %1776 = vmatprep.subr.bf16.mxu1 %v2136_v12  ;;  %1778 = vmatprep.mubr.msk.bf16.mxu1 %vm2137_vm1, %v2136_v12  ;;  %s2138_s2 = smov 96   ;;  %vm221_vm2 = vcmask 64512   ;;  %vm327_vm8 = vcmask 130048  }
  0x37   :  { %v91_v7 = vpack.c.bf16 %v68_v4, %v67_v2  ;;  %v88_v8 = vpack.c.bf16 %v61_v6, %v60_v5  ;;  %v62_v9 = vld [vmem:[#allocation2 + $0x10] sm:$0xff]  ;;  %v63_v10 = vld [vmem:[#allocation2 + $0x18] sm:$0xff]  ;;  %v1689_v14 = vld [vmem:[#allocation6 + $0xa0] ss:$0 sm:$0xff]  ;;  %v2139_v29 = vmov 1966171168  }
  0x38   :  { %1768 = vmatprep.subr.bf16.mxu0 %v90_v3  ;;  %v89_v11 = vpack.c.bf16 %v63_v10, %v62_v9  ;;  %v181_v30 = vunpack.c.l.s4 %v2139_v29  ;;  %v153_v31 = vshrl.u32 %v152_v28, 7  ;;  %v156_v33 = vand.u32 127, %v152_v28  ;;  %v1692_v36 = vld.sshfl [vmem:[%s2520_s1] sm:$0x11 pattern:$0x75316420] }
  0x39   :  { %1769 = vmatpush3.bf16.msra.mxu0 %v90_v3  ;;  %1772 = vmatprep.mubr.msk.bf16.mxu0 %vm96_vm0, %v88_v8  ;;  %v179_v37 = vcombine.high %v1692_v36, %v1692_v36  ;;  %s2140_s1 = smov 64   ;;  %s2141_s20 = smov 88   ;;  %vm1274_vm9 = vcmask 195584   ;;  %vm1534_vm10 = vcmask 523264  }
  0x3a   :  { %1770 = vmatprep.subr.bf16.mxu0 %v91_v7  ;;  %v182_v32 = vunpack.c.0.s8 %v181_v30  ;;  %v154_v34 = vadd.s32 8, %v153_v31  ;;  %vm160_vm3 = vcmp.ge.s32.totalorder %v156_v33, 8  ;;  %v196_v39 = vsub.s32 0, %v153_v31  ;;  %s2142_s21 = smov 120   ;;  %s2143_s22 = smov 56  }
  0x3b   :  { %vm157_vm5 = vcmp.lt.s32.totalorder %v156_v33, 8  ;;  %s2144_s23 = smov 80   ;;  %s2145_s24 = smov 112  }
  0x3c   :  { %v185_v35 = vsub.s32 %v182_v32, %v153_v31  ;;  %vm164_vm4 = vcmp.le.s32.totalorder %v156_v33, %v154_v34  ;;  %v169_v42 = vsel %vm157_vm5, 1.0, %v2136_v12  ;;  %s2146_s27 = smov 48   ;;  %s2147_s28 = smov 72  }
  0x3d   :  { %1771 = vmatpush3.bf16.msra.mxu0 %v91_v7  ;;  %vm166_vm6 = vmand %vm160_vm3, %vm164_vm4  ;;  %s2148_s29 = smov 104   ;;  %s2149_s30 = smov 40  }
  0x3e   :  { %1782 = vmatprep.subr.bf16.mxu0 %v2136_v12  ;;  %v186_v38 = vrot.slane %v1692_v36, %v185_v35  ;;  %vm168_vm7 = vmor %vm157_vm5, %vm166_vm6  ;;  %v193_v41 = vrot.slane %v179_v37, %v185_v35  ;;  %s2150_s5 = smov 16   ;;  %s2151_s6 = smov 24  }
  0x3f   :  { %v170_v43 = vsel %vm168_vm7, 1.0, %v2136_v12  ;;  %s1346_s7 = sld [smem:[#allocation8]]  ;;  %s2152_s9 = smov 32  }
  0x40   :  { %1773 = vmatmul.mubr.msk.bf16.vlgmr.msra.gmra.mrb[0].mxu0 %vm96_vm0, %v89_v11  ;;  %v197_v40 = vrot.slane %v186_v38, %v196_v39  ;;  %v201_v45 = vrot.slane %v193_v41, %v196_v39  ;;  %s1717_s10 = sld [smem:[#allocation8 + $0x1]]  ;;  %s2153_s12 = smov [#allocation9]  }
  0x41   :  { %1784 = vmatprep.mubr.msk.bf16.mxu0 %vm2137_vm1, %v2136_v12  ;;  %s1675_s13 = sshll.u32 %s2153_s12, 4  ;;  %s1676_s13 = int_to_ptr.vmem [resolvable:$true] %s1675_s13 }
  0x42   :  { %v204_v44 = vmul.f32 %v197_v40, %v169_v42  ;;  %v205_v46 = vmul.f32 %v197_v40, %v170_v43  ;;  %v206_v48 = vmul.f32 %v201_v45, %v169_v42  ;;  %v207_v50 = vmul.f32 %v201_v45, %v170_v43  ;;  %s2101_s14 = scalar_lea.vmem %s1676_s13, 512  ;;  %p2106_p8 = scmp.lt.s32.totalorder %s1676_s13, %s1676_s13 }
  0x43   :  { %p2102_p7 = scmp.ne.s32.totalorder %s1676_s13, %s2101_s14  ;;  %p2107_p9 = scmp.lt.s32.totalorder %s2101_s14, %s2101_s14 }
  0x44   :  { %v208_v47 = vsub.f32 1.0, %v204_v44  ;;  %v209_v49 = vsub.f32 1.0, %v205_v46  ;;  %v210_v52 = vsub.f32 1.0, %v206_v48  ;;  %v211_v57 = vsub.f32 1.0, %v207_v50 }
  0x45   :  { %s1352_s8 = ssub.f32 1.0, %s1346_s7  ;;  %p2108_p10 = por %p2107_p9, %p2106_p8 }
  0x46   :  { %v2245_v51 = vmul.f32 -10000.0, %v208_v47  ;;  %v2247_v56 = vmul.f32 -10000.0, %v209_v49  ;;  %v2250_v62 = vmul.f32 -10000.0, %v210_v52  ;;  %v2254_v4 = vmul.f32 -10000.0, %v211_v57  ;;  %s1596_s11 = ssub.f32 1.0, %s1717_s10 }
  0x47   :  { %p2109_p11 = pnand %p2108_p10, %p2102_p7 }
 0x113   :  { %v1774_v13 = vpop.f32.mrb[0].mxu0 }
 0x114   :  { %v137_v15 = vpop.f32.mrb[1].mxu0  ;;  %v146_v17 = vadd.f32 %v1774_v13, %v1689_v14 }
 0x115   :  { %v1775_v16 = vpop.f32.mrb[2].mxu0  ;;  %v138_v20 = vadd.f32 %v1689_v14, %v137_v15 }
 0x116   :  { %v149_v18 = vadd.f32 %v1775_v16, %v1689_v14  ;;  %v140_v19 = vpop.f32.mrb[3].mxu0 }
 0x117   :  { %v141_v21 = vadd.f32 %v1689_v14, %v140_v19 }
 0x118   :  { %v2220_v22 = vpack.c.bf16 %v149_v18, %v146_v17 }
 0x119   :  { %v2222_v23 = vpack.c.bf16 %v141_v21, %v138_v20 }
 0x11b   :  { %219 = vrot.lane.b32.xlu0 %v2222_v23, %s2138_s2 }
 0x11f   :  { %270 = vrot.lane.b32.xlu0 %v2220_v22, %s2138_s2 }
 0x18d   :  { %v220_v24 = vpop.permute.xlu0 %219 }
 0x18e   :  { %v226_v25 = vsel %vm221_vm2, %v220_v24, 0 }
 0x18f   :  { %1777 = vmatpush3.bf16.xpose.msra.mxu1 %v226_v25 }
 0x190   :  { %1788 = vmatprep.subr.bf16.mxu1 %v2136_v12 }
 0x191   :  { %v271_v26 = vpop.permute.xlu0 %270 }
 0x192   :  { %v276_v27 = vsel %vm221_vm2, %v271_v26, 0 }
 0x193   :  { %1783 = vmatpush3.bf16.xpose.msra.mxu0 %v276_v27 }
 0x194   :  { %1794 = vmatprep.subr.bf16.mxu0 %v2136_v12 }
 0x196   :  { %1779 = vmatmul.mubr.msk.bf16.vlgmr.msra.gmra.mrb[0].mxu1 %vm221_vm2, %v2222_v23 }
 0x197   :  { %1790 = vmatprep.mubr.msk.bf16.mxu1 %vm2137_vm1, %v2136_v12 }
 0x19a   :  { %1785 = vmatmul.mubr.msk.bf16.vlgmr.msra.gmra.mrb[4].mxu0 %vm221_vm2, %v2220_v22 }
 0x19b   :  { %1796 = vmatprep.mubr.msk.bf16.mxu0 %vm2137_vm1, %v2136_v12 }
 0x269   :  { %v262_v53 = vpop.f32.mrb[0].mxu1 }
 0x26a   :  { %v319_v54 = vmul.f32 0.35355338, %v262_v53  ;;  %v1780_v55 = vpop.f32.mrb[1].mxu1 }
 0x26b   :  { %v265_v58 = vpop.f32.mrb[2].mxu1 }
 0x26c   :  { %v320_v59 = vmul.f32 0.35355338, %v265_v58  ;;  %v1781_v60 = vpop.f32.mrb[3].mxu1  ;;  %v323_v61 = vadd.f32 %v319_v54, %v2245_v51 }
 0x26d   :  { %v312_v63 = vpop.f32.mrb[4].mxu0 }
 0x26e   :  { %v321_v0 = vmul.f32 0.35355338, %v312_v63  ;;  %v1786_v1 = vpop.f32.mrb[5].mxu0  ;;  %v328_v2 = vsel %vm327_vm8, %v323_v61, -inf  ;;  %v324_v3 = vadd.f32 %v320_v59, %v2247_v56 }
 0x26f   :  { %329 = vmax.xlane.f32.xlu1 %v328_v2  ;;  %v315_v5 = vpop.f32.mrb[6].mxu0 }
 0x270   :  { %v322_v6 = vmul.f32 0.35355338, %v315_v5  ;;  %v1787_v7 = vpop.f32.mrb[7].mxu0  ;;  %v325_v8 = vadd.f32 %v321_v0, %v2250_v62  ;;  %v331_v9 = vsel %vm327_vm8, %v324_v3, -inf }
 0x272   :  { %v334_v10 = vsel %vm327_vm8, %v325_v8, -inf  ;;  %v326_v11 = vadd.f32 %v322_v6, %v2254_v4 }
 0x273   :  { %332 = vmax.xlane.f32.xlu1 %v331_v9  ;;  %335 = vmax.xlane.f32.xlu0 %v334_v10 }
 0x274   :  { %v337_v13 = vsel %vm327_vm8, %v326_v11, -inf }
 0x277   :  { %338 = vmax.xlane.f32.xlu1 %v337_v13 }
 0x288   :  { %374 = vrot.lane.b32.xlu1 %v2222_v23, %s2140_s1 }
 0x289   :  { %421 = vrot.lane.b32.xlu0 %v2220_v22, %s2140_s1 }
 0x28c   :  { %470 = vrot.lane.b32.xlu1 %v2222_v23, %s2141_s20 }
 0x290   :  { %521 = vrot.lane.b32.xlu1 %v2220_v22, %s2141_s20 }
 0x2fc   :  { %v330_v14 = vpop.xlane.xlu1 %329 }
 0x2fd   :  { %v340_v15 = vsub.f32 %v323_v61, %v330_v14 }
 0x2ff   :  { %v344_v20 = vmul.f32 1.442695, %v340_v15 }
 0x300   :  { %v333_v16 = vpop.xlane.xlu1 %332  ;;  %v336_v17 = vpop.xlane.xlu0 %335 }
 0x301   :  { %v342_v18 = vsub.f32 %v325_v8, %v336_v17  ;;  %v341_v26 = vsub.f32 %v324_v3, %v333_v16 }
 0x303   :  { %v348_v19 = vmul.f32 1.442695, %v342_v18  ;;  %v346_v29 = vmul.f32 1.442695, %v341_v26 }
 0x304   :  { %v422_v21 = vpop.permute.xlu0 %421  ;;  %v339_v24 = vpop.xlane.xlu1 %338 }
 0x305   :  { %v343_v25 = vsub.f32 %v326_v11, %v339_v24  ;;  %1795 = vmatpush3.bf16.msra.mxu0 %v422_v21  ;;  %1953 = vpow2.f32 %v348_v19 }
 0x306   :  { %1806 = vmatprep.subr.bf16.mxu0 %v2136_v12  ;;  %1955 = vpow2.f32 %v344_v20 }
 0x307   :  { %v350_v27 = vmul.f32 1.442695, %v343_v25 }
 0x308   :  { %v375_v28 = vpop.permute.xlu1 %374 }
 0x309   :  { %1789 = vmatpush3.bf16.msra.mxu1 %v375_v28  ;;  %1957 = vpow2.f32 %v350_v27 }
 0x30a   :  { %1800 = vmatprep.subr.bf16.mxu1 %v2136_v12  ;;  %1959 = vpow2.f32 %v346_v29 }
 0x30c   :  { %v471_v38 = vpop.permute.xlu1 %470 }
 0x30d   :  { %v476_v58 = vsel %vm221_vm2, %v471_v38, 0 }
 0x30f   :  { %v1954_v30 = vpop.eup %1953 }
 0x310   :  { %v358_v31 = vsel %vm327_vm8, %v1954_v30, 0.0  ;;  %v1956_v32 = vpop.eup %1955  ;;  %v522_v39 = vpop.permute.xlu1 %521 }
 0x311   :  { %359 = vadd.xlane.f32.xlu1 %v358_v31  ;;  %v352_v33 = vsel %vm327_vm8, %v1956_v32, 0.0  ;;  %v527_v52 = vsel %vm221_vm2, %v522_v39, 0 }
 0x313   :  { %v1958_v34 = vpop.eup %1957 }
 0x314   :  { %v361_v35 = vsel %vm327_vm8, %v1958_v34, 0.0  ;;  %v1960_v36 = vpop.eup %1959 }
 0x315   :  { %353 = vadd.xlane.f32.xlu1 %v352_v33  ;;  %v355_v37 = vsel %vm327_vm8, %v1960_v36, 0.0 }
 0x319   :  { %362 = vadd.xlane.f32.xlu1 %v361_v35 }
 0x31d   :  { %356 = vadd.xlane.f32.xlu1 %v355_v37 }
 0x32e   :  { %468 = vrot.lane.b32.xlu1 %v2222_v23, %s2142_s21 }
 0x332   :  { %519 = vrot.lane.b32.xlu1 %v2220_v22, %s2142_s21 }
 0x39e   :  { %v360_v40 = vpop.xlane.xlu1 %359 }
 0x39f   :  { %1961 = vrcp.f32 %v360_v40 }
 0x3a2   :  { %v354_v41 = vpop.xlane.xlu1 %353 }
 0x3a6   :  { %v363_v42 = vpop.xlane.xlu1 %362 }
 0x3a7   :  { %1963 = vrcp.f32 %v363_v42 }
 0x3a8   :  { %1965 = vrcp.f32 %v354_v41 }
 0x3a9   :  { %v1962_v44 = vpop.eup %1961 }
 0x3aa   :  { %v357_v43 = vpop.xlane.xlu1 %356  ;;  %v370_v46 = vmul.f32 %v1962_v44, %v1954_v30 }
 0x3ab   :  { %1967 = vrcp.f32 %v357_v43 }
 0x3ae   :  { %v469_v55 = vpop.permute.xlu1 %468 }
 0x3b1   :  { %v1964_v45 = vpop.eup %1963 }
 0x3b2   :  { %v371_v47 = vmul.f32 %v1964_v45, %v1958_v34  ;;  %v1966_v48 = vpop.eup %1965  ;;  %v520_v59 = vpop.permute.xlu1 %519 }
 0x3b3   :  { %v368_v53 = vmul.f32 %v1966_v48, %v1956_v32 }
 0x3b4   :  { %v373_v49 = vpack.c.bf16 %v371_v47, %v370_v46 }
 0x3b5   :  { %v1968_v50 = vpop.eup %1967 }
 0x3b6   :  { %v369_v54 = vmul.f32 %v1968_v50, %v1960_v36  ;;  %1797 = vmatmul.mubr.msk.bf16.vlgmr.msra.gmra.mrb[8].mxu0 %vm327_vm8, %v373_v49 }
 0x3b7   :  { %1807 = vmatpush3.bf16.xpose.msra.mxu0 %v527_v52  ;;  %1808 = vmatprep.mubr.msk.bf16.mxu0 %vm2137_vm1, %v2136_v12 }
 0x3b8   :  { %v372_v57 = vpack.c.bf16 %v369_v54, %v368_v53  ;;  %1818 = vmatprep.subr.bf16.mxu0 %v2136_v12 }
 0x3ba   :  { %1791 = vmatmul.mubr.msk.bf16.vlgmr.msra.gmra.mrb[4].mxu1 %vm327_vm8, %v372_v57 }
 0x3bb   :  { %1801 = vmatpush3.bf16.xpose.msra.mxu1 %v476_v58  ;;  %1802 = vmatprep.mubr.msk.bf16.mxu1 %vm2137_vm1, %v2136_v12 }
 0x3bc   :  { %1812 = vmatprep.subr.bf16.mxu1 %v2136_v12 }
 0x3be   :  { %1809 = vmatmul.mubr.msk.bf16.vlgmr.msra.gmra.mrb[12].mxu0 %vm221_vm2, %v520_v59 }
 0x3bf   :  { %1820 = vmatprep.mubr.msk.bf16.mxu0 %vm2137_vm1, %v2136_v12 }
 0x3c2   :  { %1803 = vmatmul.mubr.msk.bf16.vlgmr.msra.gmra.mrb[8].mxu1 %vm221_vm2, %v469_v55 }
 0x3c3   :  { %1814 = vmatprep.mubr.msk.bf16.mxu1 %vm2137_vm1, %v2136_v12 }
 0x489   :  { %v2291_v60 = vpop.f32.mrb[8].mxu0 }
 0x48a   :  { %v1798_v61 = vpop.f32.mrb[9].mxu0 }
 0x48b   :  { %v2293_v63 = vpop.f32.mrb[10].mxu0 }
 0x48c   :  { %v1799_v0 = vpop.f32.mrb[11].mxu0 }
 0x48d   :  { %v2295_v1 = vpop.f32.mrb[4].mxu1 }
 0x48e   :  { %v1792_v2 = vpop.f32.mrb[5].mxu1 }
 0x48f   :  { %v2297_v3 = vpop.f32.mrb[6].mxu1 }
 0x490   :  { %v1793_v5 = vpop.f32.mrb[7].mxu1 }
 0x491   :  { %v563_v6 = vpop.f32.mrb[12].mxu0 }
 0x492   :  { %v1810_v7 = vpop.f32.mrb[13].mxu0  ;;  %v572_v11 = vmul.f32 0.35355338, %v563_v6 }
 0x493   :  { %v566_v8 = vpop.f32.mrb[14].mxu0 }
 0x494   :  { %v1811_v9 = vpop.f32.mrb[15].mxu0  ;;  %v573_v19 = vmul.f32 0.35355338, %v566_v8  ;;  %v576_v24 = vadd.f32 %v572_v11, %v2250_v62 }
 0x495   :  { %v512_v10 = vpop.f32.mrb[8].mxu1 }
 0x496   :  { %v570_v13 = vmul.f32 0.35355338, %v512_v10  ;;  %v1804_v14 = vpop.f32.mrb[9].mxu1  ;;  %v584_v26 = vsel %vm327_vm8, %v576_v24, -inf  ;;  %v577_v27 = vadd.f32 %v573_v19, %v2254_v4 }
 0x497   :  { %v515_v15 = vpop.f32.mrb[10].mxu1 }
 0x498   :  { %v571_v16 = vmul.f32 0.35355338, %v515_v15  ;;  %v1805_v17 = vpop.f32.mrb[11].mxu1  ;;  %v574_v18 = vadd.f32 %v570_v13, %v2245_v51  ;;  %v587_v28 = vsel %vm327_vm8, %v577_v27, -inf }
 0x49a   :  { %v578_v20 = vsel %vm327_vm8, %v574_v18, -inf  ;;  %v575_v21 = vadd.f32 %v571_v16, %v2247_v56 }
 0x49b   :  { %579 = vmax.xlane.f32.xlu0 %v578_v20 }
 0x49c   :  { %v581_v25 = vsel %vm327_vm8, %v575_v21, -inf }
 0x49d   :  { %582 = vmax.xlane.f32.xlu1 %v581_v25 }
 0x49f   :  { %585 = vmax.xlane.f32.xlu0 %v584_v26 }
 0x4a3   :  { %588 = vmax.xlane.f32.xlu0 %v587_v28 }
 0x4ae   :  { %624 = vrot.lane.b32.xlu1 %v2222_v23, %s2143_s22 }
 0x528   :  { %v580_v29 = vpop.xlane.xlu0 %579 }
 0x529   :  { %v590_v31 = vsub.f32 %v574_v18, %v580_v29 }
 0x52a   :  { %v583_v30 = vpop.xlane.xlu1 %582 }
 0x52b   :  { %v594_v35 = vmul.f32 1.442695, %v590_v31  ;;  %v591_v36 = vsub.f32 %v575_v21, %v583_v30 }
 0x52c   :  { %v586_v32 = vpop.xlane.xlu0 %585 }
 0x52d   :  { %v592_v33 = vsub.f32 %v576_v24, %v586_v32  ;;  %v596_v40 = vmul.f32 1.442695, %v591_v36 }
 0x52e   :  { %v625_v34 = vpop.permute.xlu1 %624 }
 0x52f   :  { %v598_v37 = vmul.f32 1.442695, %v592_v33  ;;  %1813 = vmatpush3.bf16.msra.mxu1 %v625_v34 }
 0x530   :  { %v589_v38 = vpop.xlane.xlu0 %588  ;;  %1824 = vmatprep.subr.bf16.mxu1 %v2136_v12 }
 0x531   :  { %1969 = vpow2.f32 %v598_v37  ;;  %v593_v39 = vsub.f32 %v577_v27, %v589_v38 }
 0x532   :  { %1971 = vpow2.f32 %v594_v35 }
 0x533   :  { %v600_v41 = vmul.f32 1.442695, %v593_v39 }
 0x535   :  { %1973 = vpow2.f32 %v600_v41 }
 0x536   :  { %1975 = vpow2.f32 %v596_v40 }
 0x53b   :  { %v1970_v42 = vpop.eup %1969 }
 0x53c   :  { %v608_v43 = vsel %vm327_vm8, %v1970_v42, 0.0  ;;  %v1972_v44 = vpop.eup %1971 }
 0x53d   :  { %609 = vadd.xlane.f32.xlu1 %v608_v43  ;;  %v602_v46 = vsel %vm327_vm8, %v1972_v44, 0.0 }
 0x53f   :  { %v1974_v45 = vpop.eup %1973 }
 0x540   :  { %v611_v47 = vsel %vm327_vm8, %v1974_v45, 0.0  ;;  %v1976_v48 = vpop.eup %1975 }
 0x541   :  { %603 = vadd.xlane.f32.xlu1 %v602_v46  ;;  %612 = vadd.xlane.f32.xlu0 %v611_v47  ;;  %v605_v49 = vsel %vm327_vm8, %v1976_v48, 0.0 }
 0x545   :  { %606 = vadd.xlane.f32.xlu0 %v605_v49 }
 0x552   :  { %720 = vrot.lane.b32.xlu1 %v2222_v23, %s2144_s23 }
 0x556   :  { %771 = vrot.lane.b32.xlu1 %v2220_v22, %s2144_s23 }
 0x55a   :  { %769 = vrot.lane.b32.xlu1 %v2220_v22, %s2145_s24 }
 0x55b   :  { %671 = vrot.lane.b32.xlu0 %v2220_v22, %s2143_s22 }
 0x55f   :  { %718 = vrot.lane.b32.xlu0 %v2222_v23, %s2145_s24 }
 0x5ca   :  { %v610_v50 = vpop.xlane.xlu1 %609 }
 0x5cb   :  { %1977 = vrcp.f32 %v610_v50 }
 0x5ce   :  { %v604_v52 = vpop.xlane.xlu1 %603  ;;  %v613_v53 = vpop.xlane.xlu0 %612 }
 0x5cf   :  { %1979 = vrcp.f32 %v613_v53 }
 0x5d0   :  { %1981 = vrcp.f32 %v604_v52 }
 0x5d2   :  { %v607_v54 = vpop.xlane.xlu0 %606  ;;  %v721_v55 = vpop.permute.xlu1 %720 }
 0x5d3   :  { %1983 = vrcp.f32 %v607_v54  ;;  %v726_v13 = vsel %vm221_vm2, %v721_v55, 0 }
 0x5d5   :  { %v1978_v58 = vpop.eup %1977 }
 0x5d6   :  { %v672_v57 = vpop.permute.xlu0 %671  ;;  %v620_v0 = vmul.f32 %v1978_v58, %v1970_v42  ;;  %v772_v5 = vpop.permute.xlu1 %771 }
 0x5d7   :  { %1819 = vmatpush3.bf16.msra.mxu0 %v672_v57  ;;  %v777_v10 = vsel %vm221_vm2, %v772_v5, 0 }
 0x5d8   :  { %1830 = vmatprep.subr.bf16.mxu0 %v2136_v12 }
 0x5d9   :  { %v1980_v59 = vpop.eup %1979 }
 0x5da   :  { %v1982_v61 = vpop.eup %1981  ;;  %v621_v2 = vmul.f32 %v1980_v59, %v1974_v45  ;;  %v770_v14 = vpop.permute.xlu1 %769 }
 0x5db   :  { %v618_v8 = vmul.f32 %v1982_v61, %v1972_v44  ;;  %v719_v15 = vpop.permute.xlu0 %718 }
 0x5dc   :  { %v623_v7 = vpack.c.bf16 %v621_v2, %v620_v0 }
 0x5dd   :  { %v1984_v6 = vpop.eup %1983 }
 0x5de   :  { %v619_v9 = vmul.f32 %v1984_v6, %v1976_v48  ;;  %1821 = vmatmul.mubr.msk.bf16.vlgmr.msra.gmra.mrb[16].mxu0 %vm327_vm8, %v623_v7 }
 0x5df   :  { %1832 = vmatprep.mubr.msk.bf16.mxu0 %vm2137_vm1, %v2136_v12 }
 0x5e0   :  { %1831 = vmatpush3.bf16.xpose.msra.mxu0 %v777_v10  ;;  %v622_v11 = vpack.c.bf16 %v619_v9, %v618_v8 }
 0x5e1   :  { %1842 = vmatprep.subr.bf16.mxu0 %v2136_v12 }
 0x5e2   :  { %1815 = vmatmul.mubr.msk.bf16.vlgmr.msra.gmra.mrb[12].mxu1 %vm327_vm8, %v622_v11 }
 0x5e3   :  { %1825 = vmatpush3.bf16.xpose.msra.mxu1 %v726_v13  ;;  %1826 = vmatprep.mubr.msk.bf16.mxu1 %vm2137_vm1, %v2136_v12 }
 0x5e4   :  { %1836 = vmatprep.subr.bf16.mxu1 %v2136_v12 }
 0x5e7   :  { %1833 = vmatmul.mubr.msk.bf16.vlgmr.msra.gmra.mrb[20].mxu0 %vm221_vm2, %v770_v14 }
 0x5e8   :  { %1844 = vmatprep.mubr.msk.bf16.mxu0 %vm2137_vm1, %v2136_v12 }
 0x5ea   :  { %1827 = vmatmul.mubr.msk.bf16.vlgmr.msra.gmra.mrb[16].mxu1 %vm221_vm2, %v719_v15 }
 0x5eb   :  { %1838 = vmatprep.mubr.msk.bf16.mxu1 %vm2137_vm1, %v2136_v12 }
 0x6b1   :  { %v2337_v16 = vpop.f32.mrb[16].mxu0 }
 0x6b2   :  { %v1822_v17 = vpop.f32.mrb[17].mxu0 }
 0x6b3   :  { %v2339_v18 = vpop.f32.mrb[18].mxu0 }
 0x6b4   :  { %v1928_v19 = vpack.i.bf16 %v2339_v18, %v2337_v16  ;;  %v1823_v20 = vpop.f32.mrb[19].mxu0 }
 0x6b5   :  { %v2343_v21 = vpop.f32.mrb[12].mxu1 }
 0x6b6   :  { %v1816_v24 = vpop.f32.mrb[13].mxu1 }
 0x6b7   :  { %v2345_v25 = vpop.f32.mrb[14].mxu1 }
 0x6b8   :  { %v1923_v26 = vpack.i.bf16 %v2345_v25, %v2343_v21  ;;  %v1817_v27 = vpop.f32.mrb[15].mxu1 }
 0x6ba   :  { %v813_v28 = vpop.f32.mrb[20].mxu0 }
 0x6bb   :  { %v1834_v29 = vpop.f32.mrb[21].mxu0  ;;  %v822_v33 = vmul.f32 0.35355338, %v813_v28 }
 0x6bc   :  { %v816_v30 = vpop.f32.mrb[22].mxu0 }
 0x6bd   :  { %v762_v31 = vpop.f32.mrb[16].mxu1  ;;  %v1835_v32 = vpop.f32.mrb[23].mxu0  ;;  %v823_v40 = vmul.f32 0.35355338, %v816_v30  ;;  %v826_v43 = vadd.f32 %v822_v33, %v2250_v62 }
 0x6be   :  { %v820_v34 = vmul.f32 0.35355338, %v762_v31  ;;  %v1828_v35 = vpop.f32.mrb[17].mxu1 }
 0x6bf   :  { %v765_v36 = vpop.f32.mrb[18].mxu1  ;;  %v834_v45 = vsel %vm327_vm8, %v826_v43, -inf  ;;  %v827_v46 = vadd.f32 %v823_v40, %v2254_v4 }
 0x6c0   :  { %v821_v37 = vmul.f32 0.35355338, %v765_v36  ;;  %v1829_v38 = vpop.f32.mrb[19].mxu1  ;;  %v824_v39 = vadd.f32 %v820_v34, %v2245_v51 }
 0x6c1   :  { %v837_v47 = vsel %vm327_vm8, %v827_v46, -inf }
 0x6c2   :  { %v828_v41 = vsel %vm327_vm8, %v824_v39, -inf  ;;  %v825_v42 = vadd.f32 %v821_v37, %v2247_v56 }
 0x6c3   :  { %829 = vmax.xlane.f32.xlu0 %v828_v41 }
 0x6c4   :  { %v831_v44 = vsel %vm327_vm8, %v825_v42, -inf }
 0x6c5   :  { %832 = vmax.xlane.f32.xlu1 %v831_v44 }
 0x6c7   :  { %835 = vmax.xlane.f32.xlu0 %v834_v45 }
 0x6cb   :  { %838 = vmax.xlane.f32.xlu0 %v837_v47 }
 0x6d6   :  { %874 = vrot.lane.b32.xlu1 %v2222_v23, %s2146_s27 }
 0x750   :  { %v830_v48 = vpop.xlane.xlu0 %829 }
 0x751   :  { %v840_v50 = vsub.f32 %v824_v39, %v830_v48 }
 0x752   :  { %v833_v49 = vpop.xlane.xlu1 %832 }
 0x753   :  { %v844_v55 = vmul.f32 1.442695, %v840_v50  ;;  %v841_v57 = vsub.f32 %v825_v42, %v833_v49 }
 0x754   :  { %v836_v52 = vpop.xlane.xlu0 %835 }
 0x755   :  { %v842_v53 = vsub.f32 %v826_v43, %v836_v52  ;;  %v846_v0 = vmul.f32 1.442695, %v841_v57 }
 0x756   :  { %v875_v54 = vpop.permute.xlu1 %874 }
 0x757   :  { %v848_v58 = vmul.f32 1.442695, %v842_v53  ;;  %1837 = vmatpush3.bf16.msra.mxu1 %v875_v54 }
 0x758   :  { %v839_v59 = vpop.xlane.xlu0 %838  ;;  %1848 = vmatprep.subr.bf16.mxu1 %v2136_v12 }
 0x759   :  { %1985 = vpow2.f32 %v848_v58  ;;  %v843_v61 = vsub.f32 %v827_v46, %v839_v59 }
 0x75a   :  { %1987 = vpow2.f32 %v844_v55 }
 0x75b   :  { %v850_v2 = vmul.f32 1.442695, %v843_v61 }
 0x75d   :  { %1989 = vpow2.f32 %v850_v2 }
 0x75e   :  { %1991 = vpow2.f32 %v846_v0 }
 0x763   :  { %v1986_v5 = vpop.eup %1985 }
 0x764   :  { %v858_v6 = vsel %vm327_vm8, %v1986_v5, 0.0  ;;  %v1988_v7 = vpop.eup %1987 }
 0x765   :  { %859 = vadd.xlane.f32.xlu1 %v858_v6  ;;  %v852_v9 = vsel %vm327_vm8, %v1988_v7, 0.0 }
 0x767   :  { %v1990_v8 = vpop.eup %1989 }
 0x768   :  { %v861_v10 = vsel %vm327_vm8, %v1990_v8, 0.0  ;;  %v1992_v11 = vpop.eup %1991 }
 0x769   :  { %853 = vadd.xlane.f32.xlu1 %v852_v9  ;;  %862 = vadd.xlane.f32.xlu0 %v861_v10  ;;  %v855_v13 = vsel %vm327_vm8, %v1992_v11, 0.0 }
 0x76d   :  { %856 = vadd.xlane.f32.xlu0 %v855_v13 }
 0x77a   :  { %970 = vrot.lane.b32.xlu1 %v2222_v23, %s2147_s28 }
 0x77e   :  { %1021 = vrot.lane.b32.xlu1 %v2220_v22, %s2147_s28 }
 0x782   :  { %1019 = vrot.lane.b32.xlu1 %v2220_v22, %s2148_s29 }
 0x783   :  { %921 = vrot.lane.b32.xlu0 %v2220_v22, %s2146_s27 }
 0x787   :  { %968 = vrot.lane.b32.xlu0 %v2222_v23, %s2148_s29 }
 0x7f2   :  { %v860_v14 = vpop.xlane.xlu1 %859 }
 0x7f3   :  { %1993 = vrcp.f32 %v860_v14 }
 0x7f6   :  { %v854_v15 = vpop.xlane.xlu1 %853  ;;  %v863_v17 = vpop.xlane.xlu0 %862 }
 0x7f7   :  { %1995 = vrcp.f32 %v863_v17 }
 0x7f8   :  { %1997 = vrcp.f32 %v854_v15 }
 0x7fa   :  { %v857_v20 = vpop.xlane.xlu0 %856  ;;  %v971_v24 = vpop.permute.xlu1 %970 }
 0x7fb   :  { %1999 = vrcp.f32 %v857_v20  ;;  %v976_v40 = vsel %vm221_vm2, %v971_v24, 0 }
 0x7fd   :  { %v1994_v28 = vpop.eup %1993 }
 0x7fe   :  { %v922_v27 = vpop.permute.xlu0 %921  ;;  %v870_v31 = vmul.f32 %v1994_v28, %v1986_v5  ;;  %v1022_v33 = vpop.permute.xlu1 %1021 }
 0x7ff   :  { %1843 = vmatpush3.bf16.msra.mxu0 %v922_v27  ;;  %v1027_v38 = vsel %vm221_vm2, %v1022_v33, 0 }
 0x800   :  { %1854 = vmatprep.subr.bf16.mxu0 %v2136_v12 }
 0x801   :  { %v1996_v29 = vpop.eup %1995 }
 0x802   :  { %v1998_v30 = vpop.eup %1997  ;;  %v871_v32 = vmul.f32 %v1996_v29, %v1990_v8  ;;  %v1020_v41 = vpop.permute.xlu1 %1019 }
 0x803   :  { %v868_v36 = vmul.f32 %v1998_v30, %v1988_v7  ;;  %v969_v42 = vpop.permute.xlu0 %968 }
 0x804   :  { %v873_v35 = vpack.c.bf16 %v871_v32, %v870_v31 }
 0x805   :  { %v2000_v34 = vpop.eup %1999 }
 0x806   :  { %v869_v37 = vmul.f32 %v2000_v34, %v1992_v11  ;;  %1845 = vmatmul.mubr.msk.bf16.vlgmr.msra.gmra.mrb[24].mxu0 %vm327_vm8, %v873_v35 }
 0x807   :  { %1856 = vmatprep.mubr.msk.bf16.mxu0 %vm2137_vm1, %v2136_v12 }
 0x808   :  { %1855 = vmatpush3.bf16.xpose.msra.mxu0 %v1027_v38  ;;  %v872_v39 = vpack.c.bf16 %v869_v37, %v868_v36 }
 0x809   :  { %1866 = vmatprep.subr.bf16.mxu0 %v2136_v12 }
 0x80a   :  { %1839 = vmatmul.mubr.msk.bf16.vlgmr.msra.gmra.mrb[20].mxu1 %vm327_vm8, %v872_v39 }
 0x80b   :  { %1849 = vmatpush3.bf16.xpose.msra.mxu1 %v976_v40  ;;  %1850 = vmatprep.mubr.msk.bf16.mxu1 %vm2137_vm1, %v2136_v12 }
 0x80c   :  { %1860 = vmatprep.subr.bf16.mxu1 %v2136_v12 }
 0x80f   :  { %1857 = vmatmul.mubr.msk.bf16.vlgmr.msra.gmra.mrb[28].mxu0 %vm221_vm2, %v1020_v41 }
 0x810   :  { %1868 = vmatprep.mubr.msk.bf16.mxu0 %vm2137_vm1, %v2136_v12 }
 0x812   :  { %1851 = vmatmul.mubr.msk.bf16.vlgmr.msra.gmra.mrb[24].mxu1 %vm221_vm2, %v969_v42 }
 0x813   :  { %1862 = vmatprep.mubr.msk.bf16.mxu1 %vm2137_vm1, %v2136_v12 }
 0x8d9   :  { %v2387_v43 = vpop.f32.mrb[24].mxu0 }
 0x8da   :  { %v1846_v44 = vpop.f32.mrb[25].mxu0 }
 0x8db   :  { %v2389_v45 = vpop.f32.mrb[26].mxu0 }
 0x8dc   :  { %v1938_v46 = vpack.i.bf16 %v2389_v45, %v2387_v43  ;;  %v1847_v47 = vpop.f32.mrb[27].mxu0 }
 0x8dd   :  { %v2393_v48 = vpop.f32.mrb[20].mxu1 }
 0x8de   :  { %v1840_v49 = vpop.f32.mrb[21].mxu1 }
 0x8df   :  { %v917_v50 = vpop.f32.mrb[22].mxu1  ;;  %v69_v49 = vld [vmem:[#allocation6 + $0x20] sm:$0xff] }
 0x8e0   :  { %v1933_v52 = vpack.i.bf16 %v917_v50, %v2393_v48  ;;  %v1841_v53 = vpop.f32.mrb[23].mxu1  ;;  %v70_v50 = vld [vmem:[#allocation6 + $0x28] sm:$0xff] }
 0x8e1   :  { %v71_v53 = vld [vmem:[#allocation6 + $0x30] sm:$0xff] }
 0x8e2   :  { %v1063_v54 = vpop.f32.mrb[28].mxu0 }
 0x8e3   :  { %v1858_v55 = vpop.f32.mrb[29].mxu0  ;;  %v1072_v59 = vmul.f32 0.35355338, %v1063_v54  ;;  %v72_v54 = vld [vmem:[#allocation6 + $0x38] sm:$0xff] }
 0x8e4   :  { %v1066_v57 = vpop.f32.mrb[30].mxu0  ;;  %v1282_v55 = vpack.c.bf16 %v72_v54, %v71_v53 }
 0x8e5   :  { %v1012_v12 = vpop.f32.mrb[24].mxu1  ;;  %v1859_v58 = vpop.f32.mrb[31].mxu0  ;;  %v1073_v8 = vmul.f32 0.35355338, %v1066_v57  ;;  %v1076_v11 = vadd.f32 %v1072_v59, %v2250_v62 }
 0x8e6   :  { %v1070_v61 = vmul.f32 0.35355338, %v1012_v12  ;;  %v1852_v0 = vpop.f32.mrb[25].mxu1 }
 0x8e7   :  { %v1015_v2 = vpop.f32.mrb[26].mxu1  ;;  %v1084_v14 = vsel %vm327_vm8, %v1076_v11, -inf  ;;  %v1077_v15 = vadd.f32 %v1073_v8, %v2254_v4  ;;  %v2423_v8 = vld [vmem:[#allocation6 + $0xa2] ss:$0 sm:$0xff] }
 0x8e8   :  { %v1071_v5 = vmul.f32 0.35355338, %v1015_v2  ;;  %v1853_v6 = vpop.f32.mrb[27].mxu1  ;;  %v1074_v7 = vadd.f32 %v1070_v61, %v2245_v51 }
 0x8e9   :  { %v1087_v17 = vsel %vm327_vm8, %v1077_v15, -inf }
 0x8ea   :  { %v1078_v9 = vsel %vm327_vm8, %v1074_v7, -inf  ;;  %v1075_v10 = vadd.f32 %v1071_v5, %v2247_v56 }
 0x8eb   :  { %1079 = vmax.xlane.f32.xlu0 %v1078_v9 }
 0x8ec   :  { %v1081_v13 = vsel %vm327_vm8, %v1075_v10, -inf }
 0x8ed   :  { %1082 = vmax.xlane.f32.xlu1 %v1081_v13 }
 0x8ef   :  { %1085 = vmax.xlane.f32.xlu0 %v1084_v14 }
 0x8f3   :  { %1088 = vmax.xlane.f32.xlu0 %v1087_v17 }
 0x978   :  { %v1080_v51 = vpop.xlane.xlu0 %1079 }
 0x979   :  { %v1090_v20 = vsub.f32 %v1074_v7, %v1080_v51 }
 0x97a   :  { %v1083_v24 = vpop.xlane.xlu1 %1082 }
 0x97b   :  { %v1094_v56 = vmul.f32 1.442695, %v1090_v20  ;;  %v1091_v29 = vsub.f32 %v1075_v10, %v1083_v24 }
 0x97c   :  { %v1086_v27 = vpop.xlane.xlu0 %1085 }
 0x97d   :  { %v1092_v28 = vsub.f32 %v1076_v11, %v1086_v27  ;;  %v1096_v32 = vmul.f32 1.442695, %v1091_v29 }
 0x97f   :  { %v1098_v62 = vmul.f32 1.442695, %v1092_v28 }
 0x980   :  { %v1089_v30 = vpop.xlane.xlu0 %1088 }
 0x981   :  { %2001 = vpow2.f32 %v1098_v62  ;;  %v1093_v31 = vsub.f32 %v1077_v15, %v1089_v30 }
 0x982   :  { %2003 = vpow2.f32 %v1094_v56 }
 0x983   :  { %v1100_v33 = vmul.f32 1.442695, %v1093_v31 }
 0x985   :  { %2005 = vpow2.f32 %v1100_v33 }
 0x986   :  { %2007 = vpow2.f32 %v1096_v32 }
 0x98b   :  { %v2002_v4 = vpop.eup %2001 }
 0x98c   :  { %v1108_v34 = vsel %vm327_vm8, %v2002_v4, 0.0  ;;  %v2004_v35 = vpop.eup %2003 }
 0x98d   :  { %1109 = vadd.xlane.f32.xlu1 %v1108_v34  ;;  %v1102_v37 = vsel %vm327_vm8, %v2004_v35, 0.0 }
 0x98f   :  { %v2006_v36 = vpop.eup %2005 }
 0x990   :  { %v1111_v38 = vsel %vm327_vm8, %v2006_v36, 0.0  ;;  %v2008_v39 = vpop.eup %2007 }
 0x991   :  { %1103 = vadd.xlane.f32.xlu1 %v1102_v37  ;;  %1112 = vadd.xlane.f32.xlu0 %v1111_v38  ;;  %v1105_v40 = vsel %vm327_vm8, %v2008_v39, 0.0 }
 0x995   :  { %1106 = vadd.xlane.f32.xlu0 %v1105_v40 }
 0x9a2   :  { %1124 = vrot.lane.b32.xlu1 %v2222_v23, %s2149_s30 }
 0x9a6   :  { %1924 = vrot.lane.b32.xlu1 %v1923_v26, %s2133_s26 }
 0x9aa   :  { %1929 = vrot.lane.b32.xlu1 %v1928_v19, %s2133_s26 }
 0x9ab   :  { %1171 = vrot.lane.b32.xlu0 %v2220_v22, %s2149_s30 }
 0x9ae   :  { %1939 = vrot.lane.b32.xlu1 %v1938_v46, %s2150_s5 }
 0x9af   :  { %1934 = vrot.lane.b32.xlu0 %v1933_v52, %s2150_s5  ;;  %v1281_v52 = vpack.c.bf16 %v70_v50, %v69_v49  ;;  %v2043_v50 = vld [vmem:[#allocation2 + $0x18] sm:$0xff] }
 0xa1a   :  { %v1110_v41 = vpop.xlane.xlu1 %1109 }
 0xa1b   :  { %2009 = vrcp.f32 %v1110_v41 }
 0xa1e   :  { %v1104_v23 = vpop.xlane.xlu1 %1103  ;;  %v1113_v42 = vpop.xlane.xlu0 %1112 }
 0xa1f   :  { %2011 = vrcp.f32 %v1113_v42  ;;  %v1347_v42 = vstv %s1346_s7 }
 0xa20   :  { %2013 = vrcp.f32 %v1104_v23 }
 0xa22   :  { %v1125_v21 = vpop.permute.xlu1 %1124  ;;  %v1107_v25 = vpop.xlane.xlu0 %1106 }
 0xa23   :  { %2015 = vrcp.f32 %v1107_v25  ;;  %1861 = vmatpush3.bf16.msra.mxu1 %v1125_v21  ;;  %v1353_v25 = vstv %s1352_s8 }
 0xa24   :  { %1872 = vmatprep.subr.bf16.mxu1 %v1281_v52 }
 0xa25   :  { %v2010_v18 = vpop.eup %2009 }
 0xa26   :  { %v1172_v16 = vpop.permute.xlu0 %1171  ;;  %v1120_v26 = vmul.f32 %v2010_v18, %v2002_v4  ;;  %v1925_v9 = vpop.permute.xlu1 %1924  ;;  %v2041_v18 = vld [vmem:[#allocation2] sm:$0xff] }
 0xa27   :  { %1867 = vmatpush3.bf16.msra.mxu0 %v1172_v16  ;;  %v1927_v20 = vunpack.i.h.bf16 %v1925_v9  ;;  %v1926_v24 = vunpack.i.l.bf16 %v1925_v9 }
 0xa29   :  { %v2012_v22 = vpop.eup %2011  ;;  %v1267_v4 = vsel %vm221_vm2, %v2297_v3, %v1927_v20 }
 0xa2a   :  { %v2014_v19 = vpop.eup %2013  ;;  %v1121_v44 = vmul.f32 %v2012_v22, %v2006_v36  ;;  %v1930_v10 = vpop.permute.xlu1 %1929  ;;  %v1348_v22 = vmul.f32 %v2041_v18, %v1347_v42 }
 0xa2b   :  { %v1118_v46 = vmul.f32 %v2014_v19, %v2004_v35  ;;  %v1932_v13 = vunpack.i.h.bf16 %v1930_v10  ;;  %v1931_v14 = vunpack.i.l.bf16 %v1930_v10  ;;  %v1935_v15 = vpop.permute.xlu0 %1934 }
 0xa2c   :  { %v1123_v45 = vpack.c.bf16 %v1121_v44, %v1120_v26  ;;  %v1937_v27 = vunpack.i.h.bf16 %v1935_v15  ;;  %v1936_v28 = vunpack.i.l.bf16 %v1935_v15 }
 0xa2d   :  { %v2016_v43 = vpop.eup %2015  ;;  %v1269_v29 = vsel %vm221_vm2, %v2293_v63, %v1932_v13  ;;  %v1268_v62 = vsel %vm221_vm2, %v2291_v60, %v1931_v14  ;;  %v1266_v63 = vsel %vm221_vm2, %v2295_v1, %v1926_v24 }
 0xa2e   :  { %v1119_v47 = vmul.f32 %v2016_v43, %v2008_v39  ;;  %1869 = vmatmul.mubr.msk.bf16.vlgmr.msra.gmra.mrb[32].mxu0 %vm327_vm8, %v1123_v45  ;;  %v1940_v11 = vpop.permute.xlu1 %1939  ;;  %v1271_v39 = vsel %vm327_vm8, %v1267_v4, %v1937_v27  ;;  %v1270_v40 = vsel %vm327_vm8, %v1266_v63, %v1936_v28  ;;  %v75_v63 = vld [vmem:[#allocation6 + $0x50] sm:$0xff] }
 0xa2f   :  { %v1942_v17 = vunpack.i.h.bf16 %v1940_v11  ;;  %v1941_v51 = vunpack.i.l.bf16 %v1940_v11 }
 0xa30   :  { %v1122_v48 = vpack.c.bf16 %v1119_v47, %v1118_v46  ;;  %v2042_v46 = vld [vmem:[#allocation2 + $0x8] sm:$0xff] }
 0xa31   :  { %v1272_v32 = vsel %vm327_vm8, %v1268_v62, %v1941_v51  ;;  %v1273_v33 = vsel %vm327_vm8, %v1269_v29, %v1942_v17  ;;  %v1349_v47 = vmul.f32 %v2042_v46, %v1347_v42 }
 0xa32   :  { %1863 = vmatmul.mubr.msk.bf16.vlgmr.msra.gmra.mrb[28].mxu1 %vm327_vm8, %v1122_v48 }
 0xa33   :  { %1873 = vmatpush3.bf16.msra.mxu1 %v1281_v52  ;;  %v1351_v52 = vmul.f32 %v2043_v50, %v1347_v42 }
 0xa34   :  { %1874 = vmatprep.subr.bf16.mxu1 %v1282_v55 }
 0xa37   :  { %1875 = vmatpush3.bf16.msra.mxu1 %v1282_v55 }
 0xb01   :  { %v1211_v57 = vpop.f32.mrb[32].mxu0 }
 0xb02   :  { %v1870_v12 = vpop.f32.mrb[33].mxu0 }
 0xb03   :  { %v1214_v58 = vpop.f32.mrb[34].mxu0  ;;  %v2044_v12 = vld [vmem:[#allocation2 + $0x10] sm:$0xff] }
 0xb04   :  { %v1948_v59 = vpack.i.bf16 %v1214_v58, %v1211_v57  ;;  %v1871_v61 = vpop.f32.mrb[35].mxu0  ;;  %v1350_v58 = vmul.f32 %v2044_v12, %v1347_v42 }
 0xb05   :  { %v1164_v0 = vpop.f32.mrb[28].mxu1 }
 0xb06   :  { %v1864_v2 = vpop.f32.mrb[29].mxu1  ;;  %1949 = vrot.lane.b32.xlu1 %v1948_v59, %s2151_s6 }
 0xb07   :  { %v1167_v5 = vpop.f32.mrb[30].mxu1 }
 0xb08   :  { %v1943_v6 = vpack.i.bf16 %v1167_v5, %v1164_v0  ;;  %v1865_v7 = vpop.f32.mrb[31].mxu1 }
 0xb0a   :  { %1944 = vrot.lane.b32.xlu0 %v1943_v6, %s2151_s6 }
 0xb0e   :  { %1288 = vrot.lane.b32.xlu0 %v2423_v8, %s2140_s1 }
 0xb78   :  { %v1950_v56 = vpop.permute.xlu1 %1949 }
 0xb79   :  { %v1952_v30 = vunpack.i.h.bf16 %v1950_v56  ;;  %v1951_v31 = vunpack.i.l.bf16 %v1950_v56 }
 0xb7b   :  { %v1278_v34 = vsel %vm1274_vm9, %v1273_v33, %v1952_v30  ;;  %v1277_v35 = vsel %vm1274_vm9, %v1272_v32, %v1951_v31 }
 0xb7c   :  { %v1945_v36 = vpop.permute.xlu0 %1944  ;;  %v1280_v37 = vpack.c.bf16 %v1278_v34, %v1277_v35  ;;  %v73_v34 = vld [vmem:[#allocation6 + $0x40] sm:$0xff]  ;;  %v74_v35 = vld [vmem:[#allocation6 + $0x48] sm:$0xff] }
 0xb7d   :  { %v1947_v38 = vunpack.i.h.bf16 %v1945_v36  ;;  %v1946_v60 = vunpack.i.l.bf16 %v1945_v36  ;;  %v1428_v36 = vpack.c.bf16 %v74_v35, %v73_v34 }
 0xb7f   :  { %v1275_v41 = vsel %vm1274_vm9, %v1270_v40, %v1946_v60  ;;  %v1276_v23 = vsel %vm1274_vm9, %v1271_v39, %v1947_v38  ;;  %1880 = vmatprep.subr.bf16.mxu0 %v1428_v36 }
 0xb80   :  { %v1279_v3 = vpack.c.bf16 %v1276_v23, %v1275_v41  ;;  %v1289_v1 = vpop.permute.xlu0 %1288  ;;  %1881 = vmatpush3.bf16.msra.mxu0 %v1428_v36 }
 0xb82   :  { %1876 = vmatprep.mubr.msk.bf16.mxu1 %vm96_vm0, %v1279_v3 }
 0xb83   :  { %1877 = vmatmul.mubr.msk.bf16.vlgmr.msra.gmra.mrb[32].mxu1 %vm96_vm0, %v1280_v37  ;;  %v76_v37 = vld [vmem:[#allocation6 + $0x58] sm:$0xff] }
 0xb84   :  { %v1429_v38 = vpack.c.bf16 %v76_v37, %v75_v63 }
 0xb86   :  { %1882 = vmatprep.subr.bf16.mxu0 %v1429_v38 }
 0xb87   :  { %1883 = vmatpush3.bf16.msra.mxu0 %v1429_v38 }
 0xc56   :  { %v1878_v21 = vpop.f32.mrb[32].mxu1 }
 0xc57   :  { %v1331_v16 = vpop.f32.mrb[33].mxu1  ;;  %v1340_v19 = vadd.f32 %v1878_v21, %v1289_v1 }
 0xc58   :  { %v1332_v26 = vadd.f32 %v1331_v16, %v1289_v1  ;;  %v1879_v44 = vpop.f32.mrb[34].mxu1 }
 0xc59   :  { %v1343_v43 = vadd.f32 %v1879_v44, %v1289_v1  ;;  %v1334_v45 = vpop.f32.mrb[35].mxu1  ;;  %v1356_v54 = vmul.f32 %v1353_v25, %v1340_v19 }
 0xc5a   :  { %v1354_v48 = vmul.f32 %v1353_v25, %v1332_v26  ;;  %v1335_v49 = vadd.f32 %v1334_v45, %v1289_v1 }
 0xc5b   :  { %v1357_v53 = vmul.f32 %v1353_v25, %v1343_v43  ;;  %v1360_v5 = vadd.f32 %v1356_v54, %v1350_v58 }
 0xc5c   :  { %v1355_v55 = vmul.f32 %v1353_v25, %v1335_v49  ;;  %v1358_v57 = vadd.f32 %v1354_v48, %v1348_v22 }
 0xc5d   :  { %v1361_v0 = vadd.f32 %v1357_v53, %v1351_v52  ;;  %v1368_v7 = vsel %vm96_vm0, %v1360_v5, 0.0 }
 0xc5e   :  { %v1362_v59 = vsel %vm96_vm0, %v1358_v57, 0.0  ;;  %v1359_v61 = vadd.f32 %v1355_v55, %v1349_v47 }
 0xc5f   :  { %1363 = vadd.xlane.f32.xlu1 %v1362_v59  ;;  %v1371_v6 = vsel %vm96_vm0, %v1361_v0, 0.0 }
 0xc60   :  { %v1365_v2 = vsel %vm96_vm0, %v1359_v61, 0.0 }
 0xc61   :  { %1366 = vadd.xlane.f32.xlu0 %v1365_v2 }
 0xc63   :  { %1372 = vadd.xlane.f32.xlu1 %v1371_v6  ;;  %v80_v6 = vld [vmem:[#allocation6 + $0x78] sm:$0xff] }
 0xc65   :  { %1369 = vadd.xlane.f32.xlu0 %v1368_v7 }
 0xcec   :  { %v1364_v9 = vpop.xlane.xlu1 %1363 }
 0xced   :  { %v1375_v10 = vmul.f32 0.03125, %v1364_v9  ;;  %v81_v9 = vld [vmem:[#allocation6 + $0x80] sm:$0xff] }
 0xcee   :  { %v1367_v11 = vpop.xlane.xlu0 %1366 }
 0xcef   :  { %v1379_v13 = vsub.f32 %v1358_v57, %v1375_v10  ;;  %v1376_v14 = vmul.f32 0.03125, %v1367_v11  ;;  %v82_v10 = vld [vmem:[#allocation6 + $0x88] sm:$0xff] }
 0xcf0   :  { %v1373_v15 = vpop.xlane.xlu1 %1372  ;;  %v1529_v11 = vpack.c.bf16 %v82_v10, %v81_v9  ;;  %v1591_v9 = vstv %s1717_s10 }
 0xcf1   :  { %v1380_v17 = vsub.f32 %v1359_v61, %v1376_v14  ;;  %v1378_v51 = vmul.f32 0.03125, %v1373_v15  ;;  %v1383_v20 = vmul.f32 %v1379_v13, %v1379_v13  ;;  %v77_v61 = vld [vmem:[#allocation6 + $0x60] sm:$0xff]  ;;  %v84_v14 = vld [vmem:[#allocation6 + $0x98] sm:$0xff] }
 0xcf2   :  { %v1370_v24 = vpop.xlane.xlu0 %1369 }
 0xcf3   :  { %v1382_v27 = vsub.f32 %v1361_v0, %v1378_v51  ;;  %v1377_v28 = vmul.f32 0.03125, %v1370_v24  ;;  %v1387_v56 = vsel %vm96_vm0, %v1383_v20, 0.0  ;;  %v1384_v29 = vmul.f32 %v1380_v17, %v1380_v17  ;;  %v78_v0 = vld [vmem:[#allocation6 + $0x68] sm:$0xff] }
 0xcf4   :  { %1388 = vadd.xlane.f32.xlu0 %v1387_v56  ;;  %v1527_v2 = vpack.c.bf16 %v78_v0, %v77_v61 }
 0xcf5   :  { %v1381_v62 = vsub.f32 %v1360_v5, %v1377_v28  ;;  %v1390_v30 = vsel %vm96_vm0, %v1384_v29, 0.0  ;;  %v1386_v31 = vmul.f32 %v1382_v27, %v1382_v27  ;;  %v79_v5 = vld [vmem:[#allocation6 + $0x70] sm:$0xff] }
 0xcf6   :  { %1391 = vadd.xlane.f32.xlu1 %v1390_v30  ;;  %1888 = vmatprep.subr.bf16.mxu1 %v1527_v2  ;;  %v1528_v7 = vpack.c.bf16 %v80_v6, %v79_v5  ;;  %v1597_v5 = vstv %s1596_s11 }
 0xcf7   :  { %v1385_v32 = vmul.f32 %v1381_v62, %v1381_v62  ;;  %v1396_v4 = vsel %vm96_vm0, %v1386_v31, 0.0  ;;  %1889 = vmatpush3.bf16.msra.mxu1 %v1527_v2 }
 0xcf8   :  { %1890 = vmatprep.subr.bf16.mxu1 %v1528_v7 }
 0xcf9   :  { %v1393_v33 = vsel %vm96_vm0, %v1385_v32, 0.0 }
 0xcfa   :  { %1394 = vadd.xlane.f32.xlu0 %v1393_v33  ;;  %1397 = vadd.xlane.f32.xlu1 %v1396_v4 }
 0xcfb   :  { %1891 = vmatpush3.bf16.msra.mxu1 %v1528_v7 }
 0xcfc   :  { %1892 = vmatprep.subr.bf16.mxu1 %v1529_v11 }
 0xcff   :  { %1893 = vmatpush3.bf16.msra.mxu1 %v1529_v11 }
 0xd0b   :  { %1531 = vrot.lane.b32.xlu1 %v2423_v8, %s2152_s9 }
 0xd10   :  { %1419 = vrot.lane.b32.xlu0 %v2423_v8, %s2138_s2 }
 0xd81   :  { %v1389_v60 = vpop.xlane.xlu0 %1388 }
 0xd82   :  { %v1399_v39 = vmul.f32 0.03125, %v1389_v60 }
 0xd83   :  { %v1392_v40 = vpop.xlane.xlu1 %1391 }
 0xd84   :  { %v1403_v41 = vadd.f32 1e-12, %v1399_v39  ;;  %v1400_v23 = vmul.f32 0.03125, %v1392_v40 }
 0xd86   :  { %2017 = vrsqrt.f32 %v1403_v41  ;;  %v1404_v3 = vadd.f32 1e-12, %v1400_v23 }
 0xd87   :  { %v1395_v42 = vpop.xlane.xlu0 %1394  ;;  %v1398_v1 = vpop.xlane.xlu1 %1397 }
 0xd88   :  { %2019 = vrsqrt.f32 %v1404_v3  ;;  %v1401_v21 = vmul.f32 0.03125, %v1395_v42  ;;  %v1402_v25 = vmul.f32 0.03125, %v1398_v1 }
 0xd8a   :  { %v1405_v16 = vadd.f32 1e-12, %v1401_v21  ;;  %v1406_v18 = vadd.f32 1e-12, %v1402_v25 }
 0xd8b   :  { %v2456_v45 = vpop.permute.xlu0 %1419  ;;  %v1532_v0 = vpop.permute.xlu1 %1531 }
 0xd8c   :  { %2021 = vrsqrt.f32 %v1405_v16 }
 0xd8d   :  { %2023 = vrsqrt.f32 %v1406_v18 }
 0xd90   :  { %v2018_v22 = vpop.eup %2017 }
 0xd91   :  { %v1411_v19 = vmul.f32 %v2018_v22, %v1379_v13  ;;  %v83_v13 = vld [vmem:[#allocation6 + $0x90] sm:$0xff] }
 0xd92   :  { %v2020_v26 = vpop.eup %2019  ;;  %v1530_v15 = vpack.c.bf16 %v84_v14, %v83_v13 }
 0xd93   :  { %v1412_v44 = vmul.f32 %v2020_v26, %v1380_v17  ;;  %v1415_v43 = vmul.f32 %v2423_v8, %v1411_v19  ;;  %v1712_v17 = vld [vmem:[#allocation6 + $0xa1] ss:$0 sm:$0xff] }
 0xd94   :  { %1894 = vmatprep.subr.bf16.mxu1 %v1530_v15 }
 0xd95   :  { %v1416_v46 = vmul.f32 %v2423_v8, %v1412_v44  ;;  %v2460_v50 = vadd.f32 %v2456_v45, %v1415_v43  ;;  %1895 = vmatpush3.bf16.msra.mxu1 %v1530_v15 }
 0xd96   :  { %v2022_v47 = vpop.eup %2021 }
 0xd97   :  { %v2024_v48 = vpop.eup %2023  ;;  %v1413_v49 = vmul.f32 %v2022_v47, %v1381_v62  ;;  %v2463_v52 = vadd.f32 %v2456_v45, %v1416_v46 }
 0xd98   :  { %v1414_v53 = vmul.f32 %v2024_v48, %v1382_v27 }
 0xd99   :  { %v1417_v54 = vmul.f32 %v2423_v8, %v1413_v49  ;;  %v1426_v55 = vpack.c.bf16 %v2463_v52, %v2460_v50 }
 0xd9a   :  { %v1418_v57 = vmul.f32 %v2423_v8, %v1414_v53 }
 0xd9b   :  { %1884 = vmatprep.mubr.msk.bf16.mxu0 %vm96_vm0, %v1426_v55  ;;  %v2471_v12 = vadd.f32 %v2456_v45, %v1417_v54 }
 0xd9c   :  { %v2474_v58 = vadd.f32 %v2456_v45, %v1418_v57 }
 0xd9e   :  { %v1427_v59 = vpack.c.bf16 %v2474_v58, %v2471_v12 }
 0xda0   :  { %1885 = vmatmul.mubr.msk.bf16.vlgmr.msra.gmra.mrb[36].mxu0 %vm96_vm0, %v1427_v59 }
 0xe73   :  { %v1886_v51 = vpop.f32.mrb[36].mxu0 }
 0xe74   :  { %v1483_v20 = vadd.f32 %v1886_v51, %v1712_v17  ;;  %v1474_v24 = vpop.f32.mrb[37].mxu0 }
 0xe75   :  { %v1475_v27 = vadd.f32 %v1712_v17, %v1474_v24  ;;  %v1887_v28 = vpop.f32.mrb[38].mxu0  ;;  %v1592_v24 = vmul.f32 %v1591_v9, %v2460_v50 }
 0xe76   :  { %v1491_v56 = vmul.f32 %v1483_v20, %v1483_v20  ;;  %v1486_v29 = vadd.f32 %v1887_v28, %v1712_v17  ;;  %v1477_v62 = vpop.f32.mrb[39].mxu0  ;;  %v1595_v28 = vmul.f32 %v1591_v9, %v2474_v58 }
 0xe77   :  { %v1489_v30 = vmul.f32 %v1475_v27, %v1475_v27  ;;  %v1478_v31 = vadd.f32 %v1712_v17, %v1477_v62  ;;  %v1594_v17 = vmul.f32 %v1591_v9, %v2471_v12 }
 0xe78   :  { %v1495_v32 = vmul.f32 %v1491_v56, %v1483_v20  ;;  %v1492_v33 = vmul.f32 %v1486_v29, %v1486_v29 }
 0xe79   :  { %v1493_v4 = vmul.f32 %v1489_v30, %v1475_v27  ;;  %v1490_v34 = vmul.f32 %v1478_v31, %v1478_v31  ;;  %v1593_v30 = vmul.f32 %v1591_v9, %v2463_v52 }
 0xe7a   :  { %v1499_v35 = vmul.f32 0.044715, %v1495_v32  ;;  %v1496_v36 = vmul.f32 %v1492_v33, %v1486_v29 }
 0xe7b   :  { %v1497_v63 = vmul.f32 0.044715, %v1493_v4  ;;  %v1494_v37 = vmul.f32 %v1490_v34, %v1478_v31 }
 0xe7c   :  { %v1503_v38 = vadd.f32 %v1499_v35, %v1483_v20  ;;  %v1500_v60 = vmul.f32 0.044715, %v1496_v36 }
 0xe7d   :  { %v1501_v39 = vadd.f32 %v1497_v63, %v1475_v27  ;;  %v1498_v40 = vmul.f32 0.044715, %v1494_v37 }
 0xe7e   :  { %v1507_v41 = vmul.f32 0.7978846, %v1503_v38  ;;  %v1504_v23 = vadd.f32 %v1500_v60, %v1486_v29 }
 0xe7f   :  { %v1505_v3 = vmul.f32 0.7978846, %v1501_v39  ;;  %v1502_v42 = vadd.f32 %v1498_v40, %v1478_v31 }
 0xe80   :  { %2025 = vtanh.f32 %v1507_v41  ;;  %v1508_v1 = vmul.f32 0.7978846, %v1504_v23 }
 0xe81   :  { %2027 = vtanh.f32 %v1505_v3  ;;  %v1506_v21 = vmul.f32 0.7978846, %v1502_v42 }
 0xe82   :  { %2029 = vtanh.f32 %v1508_v1 }
 0xe83   :  { %2031 = vtanh.f32 %v1506_v21 }
 0xe8a   :  { %v2026_v25 = vpop.eup %2025 }
 0xe8b   :  { %v2028_v16 = vpop.eup %2027  ;;  %v1515_v18 = vadd.f32 1.0, %v2026_v25 }
 0xe8c   :  { %v2030_v22 = vpop.eup %2029  ;;  %v1513_v19 = vadd.f32 1.0, %v2028_v16 }
 0xe8d   :  { %v2032_v26 = vpop.eup %2031  ;;  %v1519_v44 = vmul.f32 0.5, %v1515_v18  ;;  %v1516_v43 = vadd.f32 1.0, %v2030_v22 }
 0xe8e   :  { %v1517_v46 = vmul.f32 0.5, %v1513_v19  ;;  %v1514_v47 = vadd.f32 1.0, %v2032_v26 }
 0xe8f   :  { %v1520_v48 = vmul.f32 0.5, %v1516_v43  ;;  %v1523_v53 = vmul.f32 %v1519_v44, %v1483_v20 }
 0xe90   :  { %v1518_v49 = vmul.f32 0.5, %v1514_v47  ;;  %v1521_v55 = vmul.f32 %v1517_v46, %v1475_v27 }
 0xe91   :  { %v1524_v54 = vmul.f32 %v1520_v48, %v1486_v29 }
 0xe92   :  { %v1522_v57 = vmul.f32 %v1518_v49, %v1478_v31 }
 0xe93   :  { %v1526_v59 = vpack.c.bf16 %v1524_v54, %v1523_v53 }
 0xe94   :  { %v1525_v61 = vpack.c.bf16 %v1522_v57, %v1521_v55 }
 0xe96   :  { %1896 = vmatprep.mubr.msk.bf16.mxu1 %vm1534_vm10, %v1525_v61 }
 0xe97   :  { %1897 = vmatmul.mubr.msk.bf16.vlgmr.msra.gmra.mrb[36].mxu1 %vm1534_vm10, %v1526_v59 }
 0xf6a   :  { %v1898_v2 = vpop.f32.mrb[36].mxu1 }
 0xf6b   :  { %v1584_v6 = vadd.f32 %v1898_v2, %v1532_v0  ;;  %v1575_v7 = vpop.f32.mrb[37].mxu1 }
 0xf6c   :  { %v1576_v10 = vadd.f32 %v1575_v7, %v1532_v0  ;;  %v1899_v11 = vpop.f32.mrb[38].mxu1 }
 0xf6d   :  { %v1600_v13 = vmul.f32 %v1597_v5, %v1584_v6  ;;  %v1587_v14 = vadd.f32 %v1899_v11, %v1532_v0  ;;  %v1578_v15 = vpop.f32.mrb[39].mxu1 }
 0xf6e   :  { %v1598_v51 = vmul.f32 %v1597_v5, %v1576_v10  ;;  %v1579_v20 = vadd.f32 %v1578_v15, %v1532_v0 }
 0xf6f   :  { %v1601_v27 = vmul.f32 %v1597_v5, %v1587_v14  ;;  %v1604_v56 = vadd.f32 %v1600_v13, %v1594_v17 }
 0xf70   :  { %v1599_v29 = vmul.f32 %v1597_v5, %v1579_v20  ;;  %v1602_v62 = vadd.f32 %v1598_v51, %v1592_v24 }
 0xf71   :  { %v1605_v31 = vadd.f32 %v1601_v27, %v1595_v28  ;;  %v1612_v50 = vsel %vm96_vm0, %v1604_v56, 0.0 }
 0xf72   :  { %v1606_v32 = vsel %vm96_vm0, %v1602_v62, 0.0  ;;  %v1603_v33 = vadd.f32 %v1599_v29, %v1593_v30 }
 0xf73   :  { %1607 = vadd.xlane.f32.xlu1 %v1606_v32  ;;  %v1615_v12 = vsel %vm96_vm0, %v1605_v31, 0.0 }
 0xf74   :  { %v1609_v4 = vsel %vm96_vm0, %v1603_v33, 0.0 }
 0xf75   :  { %1610 = vadd.xlane.f32.xlu0 %v1609_v4 }
 0xf77   :  { %1616 = vadd.xlane.f32.xlu1 %v1615_v12 }
 0xf79   :  { %1613 = vadd.xlane.f32.xlu0 %v1612_v50 }
0x1000   :  { %v1608_v58 = vpop.xlane.xlu1 %1607 }
0x1001   :  { %v1618_v34 = vmul.f32 0.03125, %v1608_v58 }
0x1002   :  { %v1611_v35 = vpop.xlane.xlu0 %1610 }
0x1003   :  { %v1622_v36 = vsub.f32 %v1602_v62, %v1618_v34  ;;  %v1619_v63 = vmul.f32 0.03125, %v1611_v35 }
0x1004   :  { %v1617_v52 = vpop.xlane.xlu1 %1616 }
0x1005   :  { %v1623_v37 = vsub.f32 %v1603_v33, %v1619_v63  ;;  %v1621_v38 = vmul.f32 0.03125, %v1617_v52  ;;  %v1626_v60 = vmul.f32 %v1622_v36, %v1622_v36 }
0x1006   :  { %v1614_v39 = vpop.xlane.xlu0 %1613 }
0x1007   :  { %v1625_v40 = vsub.f32 %v1605_v31, %v1621_v38  ;;  %v1620_v41 = vmul.f32 0.03125, %v1614_v39  ;;  %v1630_v23 = vsel %vm96_vm0, %v1626_v60, 0.0  ;;  %v1627_v3 = vmul.f32 %v1623_v37, %v1623_v37 }
0x1008   :  { %1631 = vadd.xlane.f32.xlu0 %v1630_v23 }
0x1009   :  { %v1624_v42 = vsub.f32 %v1604_v56, %v1620_v41  ;;  %v1633_v1 = vsel %vm96_vm0, %v1627_v3, 0.0  ;;  %v1629_v21 = vmul.f32 %v1625_v40, %v1625_v40 }
0x100a   :  { %1634 = vadd.xlane.f32.xlu1 %v1633_v1 }
0x100b   :  { %v1628_v25 = vmul.f32 %v1624_v42, %v1624_v42  ;;  %v1639_v18 = vsel %vm96_vm0, %v1629_v21, 0.0 }
0x100d   :  { %v1636_v16 = vsel %vm96_vm0, %v1628_v25, 0.0 }
0x100e   :  { %1637 = vadd.xlane.f32.xlu0 %v1636_v16  ;;  %1640 = vadd.xlane.f32.xlu1 %v1639_v18 }
0x1095   :  { %v1632_v22 = vpop.xlane.xlu0 %1631 }
0x1096   :  { %v1642_v19 = vmul.f32 0.03125, %v1632_v22 }
0x1097   :  { %v1635_v26 = vpop.xlane.xlu1 %1634 }
0x1098   :  { %v1646_v44 = vadd.f32 1e-12, %v1642_v19  ;;  %v1643_v43 = vmul.f32 0.03125, %v1635_v26 }
0x109a   :  { %2033 = vrsqrt.f32 %v1646_v44  ;;  %v1647_v46 = vadd.f32 1e-12, %v1643_v43 }
0x109b   :  { %v1638_v47 = vpop.xlane.xlu0 %1637  ;;  %v1641_v48 = vpop.xlane.xlu1 %1640 }
0x109c   :  { %2035 = vrsqrt.f32 %v1647_v46  ;;  %v1644_v49 = vmul.f32 0.03125, %v1638_v47  ;;  %v1645_v53 = vmul.f32 0.03125, %v1641_v48 }
0x109e   :  { %v1648_v54 = vadd.f32 1e-12, %v1644_v49  ;;  %v1649_v55 = vadd.f32 1e-12, %v1645_v53 }
0x10a0   :  { %2037 = vrsqrt.f32 %v1648_v54 }
0x10a1   :  { %2039 = vrsqrt.f32 %v1649_v55 }
0x10a4   :  { %v2034_v57 = vpop.eup %2033 }
0x10a5   :  { %v1654_v59 = vmul.f32 %v2034_v57, %v1622_v36 }
0x10a6   :  { %v2036_v61 = vpop.eup %2035 }
0x10a7   :  { %v1655_v0 = vmul.f32 %v2036_v61, %v1623_v37  ;;  %v1658_v2 = vmul.f32 %v2423_v8, %v1654_v59 }
0x10a9   :  { %v1659_v5 = vmul.f32 %v2423_v8, %v1655_v0  ;;  %v1662_v6 = vadd.f32 %v1658_v2, %v2456_v45 }
0x10aa   :  { %v2038_v7 = vpop.eup %2037 }
0x10ab   :  { %v2040_v9 = vpop.eup %2039  ;;  %v1656_v10 = vmul.f32 %v2038_v7, %v1624_v42  ;;  %v1663_v11 = vadd.f32 %v1659_v5, %v2456_v45  ;;  %1666 = vst.msk [vmem:[#allocation9] sm:$0xff] %vm96_vm0, %v1662_v6 }
0x10ac   :  { %v1657_v13 = vmul.f32 %v2040_v9, %v1625_v40 }
0x10ad   :  { %v1660_v14 = vmul.f32 %v2423_v8, %v1656_v10  ;;  %1667 = vst.msk [vmem:[#allocation9 + $0x8] sm:$0xff] %vm96_vm0, %v1663_v11 }
0x10ae   :  { %v1661_v15 = vmul.f32 %v2423_v8, %v1657_v13 }
0x10af   :  { %v1664_v17 = vadd.f32 %v1660_v14, %v2456_v45 }
0x10b0   :  { %v1665_v51 = vadd.f32 %v1661_v15, %v2456_v45 }
0x10b1   :  { %1668 = vst.msk [vmem:[#allocation9 + $0x10] sm:$0xff] %vm96_vm0, %v1664_v17 }
0x10b2   :  { %1669 = vst.msk [vmem:[#allocation9 + $0x18] sm:$0xff] %vm96_vm0, %v1665_v51 }
0x10b3   :  { %2112 = shalt.err (!%p2109_p11)
}
0x10b4   :  { %s2113_s15 = scalar_lea.hbm %s2523_s4, 512 }
0x10b5   :  { %p2114_p12 = scmp.ne.s32.totalorder %s2523_s4, %s2113_s15  ;;  %p2117_p13 = scmp.lt.u32.totalorder %s2113_s15, %s2523_s4 }
0x10b7   :  { %p2119_p0 = pnand %p2117_p13, %p2114_p12 }
0x10b9   :  { %2122 = shalt.err (!%p2119_p0)
}
0x10ba   :  { %1681 = dma.vmem_to_hbm [thread:$0]  %s1676_s13, 512, %s2523_s4, [#allocation4], %s2132_s25, %s2132_s25, %s2133_s26  }
0x10bb   :  { %2129 = dma.done.wait [#allocation4], 512  }
0x10bc   :  { %2130 = vsyncadd [#allocation4], 4294966784 }
0x10bd   :  { %1685 = vsyncpa [#allocation3], 1 }
0x10be   :  { %1686 = vsyncpa [#allocation7], 1 }
0x10bf   :  { %1687 = vsyncpa [#allocation4], 1 }
0x10c0   :  { %1688 = vsyncpa [#allocation5], 1 }

</bundles_post_ra>
